<compile_context>
chip_gen: v7x
topology: tpu7x:2x2x1
jax: 0.10.0
libtpu: 0.0.40
codegen_flags: <defaults>
</compile_context>

<pallas_src>
import functools

import jax
import jax.numpy as jnp
from jax.experimental import pallas as pl
from jax.experimental.pallas import tpu as pltpu

HIDDEN = 32
SEQ = 8
BATCH = 2
D_TEXT, D_VIDEO, D_AUDIO = 32, 20, 16
NCE_TEMP = 0.07
RATIO_K = 0.1
NUM_MOD = 3


# ----------------------------------------------------------------------------
# Kernel 1: per-modality encoder (projection + attention + pooling + sentiment)
# ----------------------------------------------------------------------------
def _encoder_kernel(x_ref, mask_k_ref, mask_q_ref,
                    w_in_ref, b_in_ref, wqkv_ref, wo_ref, w_s_ref, b_s_ref,
                    feat_ref, pooled_ref, senti_ref, *, scale):
    x = x_ref[0]                                   # (B, L, D)  zero-padded input
    B, L, D = x.shape
    mask_k = mask_k_ref[...]                       # (B, 1, L)
    mask_q = mask_q_ref[...]                       # (B, L, 1)

    # Linear + ReLU projection over the flattened batch (one MXU push).
    x2 = x.reshape(B * L, D)
    h = jnp.dot(x2, w_in_ref[0], preferred_element_type=jnp.float32) + b_in_ref[0]
    h = jnp.maximum(h, 0.0)                        # (B*L, D)

    # Fused QKV projection: single (B*L, D) @ (D, 3D) matmul.
    qkv = jnp.dot(h, wqkv_ref[0], preferred_element_type=jnp.float32)   # (B*L, 3D)
    q = qkv[:, 0 * D:1 * D].reshape(B, L, D)
    k = qkv[:, 1 * D:2 * D].reshape(B, L, D)
    v = qkv[:, 2 * D:3 * D].reshape(B, L, D)

    bias = (1.0 - mask_k) * -1e9                   # (B, 1, L) additive key mask
    s = jnp.einsum("bqd,bkd->bqk", q, k, preferred_element_type=jnp.float32)
    s = s * scale + bias
    s = s - jnp.max(s, axis=-1, keepdims=True)
    p = jnp.exp(s)
    p = p * pl.reciprocal(jnp.sum(p, axis=-1, keepdims=True), approx=True)
    ctx = jnp.einsum("bqk,bkd->bqd", p, v, preferred_element_type=jnp.float32)

    attn = jnp.dot(ctx.reshape(B * L, D), wo_ref[0],
                   preferred_element_type=jnp.float32)                  # (B*L, D)
    out = (h + attn).reshape(B, L, D)              # residual connection
    feat_ref[0] = out.astype(feat_ref.dtype)

    # Masked mean pooling + tanh sentiment head (epilogue, no extra launches).
    denom = jnp.sum(mask_q, axis=1) + 1e-6         # (B, 1)
    pooled = jnp.sum(out * mask_q, axis=1) / denom                      # (B, D)
    pooled_ref[0] = pooled.astype(pooled_ref.dtype)
    senti = jnp.tanh(jnp.dot(pooled, w_s_ref[0],
                             preferred_element_type=jnp.float32) + b_s_ref[0])
    senti_ref[0] = senti.astype(senti_ref.dtype)   # (B, 1)


def unimodal_encoder(x_stack, mask_k, mask_q, enc):
    M, B, L, D = x_stack.shape
    scale = 1.0 / float(D) ** 0.5
    return pl.pallas_call(
        functools.partial(_encoder_kernel, scale=scale),
        grid=(M,),
        in_specs=[
            pl.BlockSpec((1, B, L, D), lambda m: (m, 0, 0, 0)),
            pl.BlockSpec((B, 1, L), lambda m: (0, 0, 0)),
            pl.BlockSpec((B, L, 1), lambda m: (0, 0, 0)),
            pl.BlockSpec((1, D, D), lambda m: (m, 0, 0)),
            pl.BlockSpec((1, 1, D), lambda m: (m, 0, 0)),
            pl.BlockSpec((1, D, 3 * D), lambda m: (m, 0, 0)),
            pl.BlockSpec((1, D, D), lambda m: (m, 0, 0)),
            pl.BlockSpec((1, D, 1), lambda m: (m, 0, 0)),
            pl.BlockSpec((1, 1, 1), lambda m: (m, 0, 0)),
        ],
        out_specs=(
            pl.BlockSpec((1, B, L, D), lambda m: (m, 0, 0, 0)),
            pl.BlockSpec((1, B, D), lambda m: (m, 0, 0)),
            pl.BlockSpec((1, B, 1), lambda m: (m, 0, 0)),
        ),
        out_shape=(
            jax.ShapeDtypeStruct((M, B, L, D), jnp.float32),
            jax.ShapeDtypeStruct((M, B, D), jnp.float32),
            jax.ShapeDtypeStruct((M, B, 1), jnp.float32),
        ),
        compiler_params=pltpu.CompilerParams(dimension_semantics=("parallel",)),
    )(x_stack, mask_k, mask_q, enc["w_in"], enc["b_in"], enc["wqkv"],
      enc["wo"], enc["w_s"], enc["b_s"])


# ----------------------------------------------------------------------------
# Kernel 2: sentiment-ratio fusion + multimodal attention + NCE + CLS head
# ----------------------------------------------------------------------------
def _nce_pair(x, y, temp):
    xn = x * jax.lax.rsqrt(jnp.sum(x * x, axis=-1, keepdims=True) + 1e-8)
    yn = y * jax.lax.rsqrt(jnp.sum(y * y, axis=-1, keepdims=True) + 1e-8)
    sim = jnp.dot(xn, yn.T, preferred_element_type=jnp.float32) / temp   # (B, B)
    m = jnp.max(sim, axis=-1, keepdims=True)
    lse = jnp.log(jnp.sum(jnp.exp(sim - m), axis=-1, keepdims=True)) + m
    row = jax.lax.broadcasted_iota(jnp.int32, sim.shape, 0)
    col = jax.lax.broadcasted_iota(jnp.int32, sim.shape, 1)
    diag = jnp.sum(jnp.where(row == col, sim, 0.0), axis=-1, keepdims=True)
    return jnp.mean(lse - diag)


def _fusion_cls_kernel(feat_ref, pooled_ref, senti_ref, multi_ref,
                       mask3_k_ref, mask3_q_ref,
                       wqkv_ref, wo_ref, w1_ref, b1_ref, w2_ref, b2_ref,
                       pred_ref, nce_ref, *, scale, use_ratio, temp, k_ratio):
    feats = feat_ref[...]                          # (3, B, L, D)
    M, B, L, D = feats.shape
    S = M * L
    mask3_k = mask3_k_ref[...]                     # (B, 1, S)
    mask3_q = mask3_q_ref[...]                     # (B, S, 1)

    # calculate_ratio_senti(uni_senti, multi_senti, k): softmax over modalities
    # of agreement with the multimodal label.
    # TODO(synk): exact formula of calculate_ratio_senti is not available.
    if use_ratio:
        senti = senti_ref[...]                     # (3, B, 1, 1)
        multi = multi_ref[...]                     # (1, B, 1, 1)
        logits = -jnp.abs(senti - multi) * (1.0 / k_ratio)
        logits = logits - jnp.max(logits, axis=0, keepdims=True)
        e = jnp.exp(logits)
        ratio = e * pl.reciprocal(jnp.sum(e, axis=0, keepdims=True), approx=True)
    else:
        ratio = jnp.full((M, B, 1, 1), 1.0 / M, jnp.float32)

    weighted = feats * ratio                       # (3, B, L, D)
    fused_in = jnp.concatenate([weighted[0], weighted[1], weighted[2]], axis=1)

    # Fused QKV over the full concatenated sequence, one MXU push.
    x2 = fused_in.reshape(B * S, D)
    qkv = jnp.dot(x2, wqkv_ref[...], preferred_element_type=jnp.float32)  # (B*S, 3D)
    q = qkv[:, 0 * D:1 * D].reshape(B, S, D)
    k = qkv[:, 1 * D:2 * D].reshape(B, S, D)
    v = qkv[:, 2 * D:3 * D].reshape(B, S, D)

    bias = (1.0 - mask3_k) * -1e9                  # (B, 1, S)
    s = jnp.einsum("bqd,bkd->bqk", q, k, preferred_element_type=jnp.float32)
    s = s * scale + bias
    s = s - jnp.max(s, axis=-1, keepdims=True)
    p = jnp.exp(s)
    p = p * pl.reciprocal(jnp.sum(p, axis=-1, keepdims=True), approx=True)
    ctx = jnp.einsum("bqk,bkd->bqd", p, v, preferred_element_type=jnp.float32)

    attn = jnp.dot(ctx.reshape(B * S, D), wo_ref[...],
                   preferred_element_type=jnp.float32)
    out = (x2 + attn).reshape(B, S, D)             # residual connection

    # SentiCLS: masked-mean pooling over the 3L tokens + 2-layer MLP head.
    denom = jnp.sum(mask3_q, axis=1) + 1e-6        # (B, 1)
    pooled = jnp.sum(out * mask3_q, axis=1) / denom                     # (B, D)
    h1 = jnp.dot(pooled, w1_ref[...], preferred_element_type=jnp.float32) + b1_ref[...]
    h1 = jnp.maximum(h1, 0.0)
    pred = jnp.dot(h1, w2_ref[...], preferred_element_type=jnp.float32) + b2_ref[...]
    pred_ref[...] = pred.astype(pred_ref.dtype)

    # InfoNCE between pooled unimodal features (text-video, text-audio).
    uni = pooled_ref[...]                          # (3, B, D)
    nce = 0.5 * (_nce_pair(uni[0], uni[1], temp) + _nce_pair(uni[0], uni[2], temp))
    nce_ref[...] = nce.reshape(1, 1).astype(nce_ref.dtype)


def fusion_cls(feats, pooled, senti4, multi4, mask3_k, mask3_q, pf, pcls, use_ratio):
    M, B, L, D = feats.shape
    S = M * L
    scale = 1.0 / float(D) ** 0.5
    return pl.pallas_call(
        functools.partial(_fusion_cls_kernel, scale=scale, use_ratio=use_ratio,
                          temp=NCE_TEMP, k_ratio=RATIO_K),
        grid=(1,),
        in_specs=[
            pl.BlockSpec((M, B, L, D), lambda i: (0, 0, 0, 0)),
            pl.BlockSpec((M, B, D), lambda i: (0, 0, 0)),
            pl.BlockSpec((M, B, 1, 1), lambda i: (0, 0, 0, 0)),
            pl.BlockSpec((1, B, 1, 1), lambda i: (0, 0, 0, 0)),
            pl.BlockSpec((B, 1, S), lambda i: (0, 0, 0)),
            pl.BlockSpec((B, S, 1), lambda i: (0, 0, 0)),
            pl.BlockSpec((D, 3 * D), lambda i: (0, 0)),
            pl.BlockSpec((D, D), lambda i: (0, 0)),
            pl.BlockSpec((D, D), lambda i: (0, 0)),
            pl.BlockSpec((1, D), lambda i: (0, 0)),
            pl.BlockSpec((D, 1), lambda i: (0, 0)),
            pl.BlockSpec((1, 1), lambda i: (0, 0)),
        ],
        out_specs=(
            pl.BlockSpec((B, 1), lambda i: (0, 0)),
            pl.BlockSpec((1, 1), lambda i: (0, 0)),
        ),
        out_shape=(
            jax.ShapeDtypeStruct((B, 1), jnp.float32),
            jax.ShapeDtypeStruct((1, 1), jnp.float32),
        ),
    )(feats, pooled, senti4, multi4, mask3_k, mask3_q,
      pf["wqkv"], pf["wo"], pcls["w1"], pcls["b1"], pcls["w2"], pcls["b2"])


# ----------------------------------------------------------------------------
# Parameter construction (deterministic, synthetic, pre-stacked per modality)
# ----------------------------------------------------------------------------
def init_params(key):
    def dense(k, din, dout):
        kw, kb = jax.random.split(k)
        return (jax.random.normal(kw, (din, dout), jnp.float32) * 0.02,
                jax.random.normal(kb, (dout,), jnp.float32) * 0.02)

    keys = jax.random.split(key, 32)
    ki = iter(keys)
    D = HIDDEN
    w_in_s, b_in_s, wqkv_s, wo_s, w_s_s, b_s_s = [], [], [], [], [], []
    for din in (D_TEXT, D_VIDEO, D_AUDIO):
        w_in, b_in = dense(next(ki), din, D)
        w_in = jnp.pad(w_in, ((0, D - din), (0, 0)))          # zero-pad rows to D
        wq, _ = dense(next(ki), D, D)
        wk, _ = dense(next(ki), D, D)
        wv, _ = dense(next(ki), D, D)
        wo, _ = dense(next(ki), D, D)
        w_s, b_s = dense(next(ki), D, 1)
        w_in_s.append(w_in)
        b_in_s.append(b_in.reshape(1, D))
        wqkv_s.append(jnp.concatenate([wq, wk, wv], axis=1))  # fused (D, 3D)
        wo_s.append(wo)
        w_s_s.append(w_s)
        b_s_s.append(b_s.reshape(1, 1))
    enc = dict(w_in=jnp.stack(w_in_s), b_in=jnp.stack(b_in_s),
               wqkv=jnp.stack(wqkv_s), wo=jnp.stack(wo_s),
               w_s=jnp.stack(w_s_s), b_s=jnp.stack(b_s_s))

    wq, _ = dense(next(ki), D, D)
    wk, _ = dense(next(ki), D, D)
    wv, _ = dense(next(ki), D, D)
    wo, _ = dense(next(ki), D, D)
    fusion = dict(wqkv=jnp.concatenate([wq, wk, wv], axis=1), wo=wo)

    w1, b1 = dense(next(ki), D, D)
    w2, b2 = dense(next(ki), D, 1)
    cls = dict(w1=w1, b1=b1.reshape(1, D), w2=w2, b2=b2.reshape(1, 1))
    return dict(enc=enc, fusion=fusion, cls=cls)


# ----------------------------------------------------------------------------
# KMSA forward
# ----------------------------------------------------------------------------
def kmsa_forward(params, text, video, audio, mask, multi_senti):
    B, L, _ = text.shape
    D = HIDDEN

    # Pad video/audio features to HIDDEN so all modalities share one stacked
    # input / weight tensor (pads line up with zero-padded w_in rows).
    pad_v = jnp.pad(video, ((0, 0), (0, 0), (0, D - video.shape[-1])))
    pad_a = jnp.pad(audio, ((0, 0), (0, 0), (0, D - audio.shape[-1])))
    x_stack = jnp.stack([text, pad_v, pad_a], axis=0)          # (3, B, L, D)

    mask_k = mask.reshape(B, 1, L)
    mask_q = mask.reshape(B, L, 1)
    mask3 = jnp.concatenate([mask] * NUM_MOD, axis=1)          # (B, 3L)
    mask3_k = mask3.reshape(B, 1, NUM_MOD * L)
    mask3_q = mask3.reshape(B, NUM_MOD * L, 1)

    # UnimodalEncoder: features + pooled features + unimodal sentiments.
    feats, pooled, senti = unimodal_encoder(x_stack, mask_k, mask_q, params["enc"])

    use_ratio = multi_senti is not None
    multi = multi_senti if use_ratio else jnp.zeros((B, 1), jnp.float32)
    senti4 = senti.reshape(NUM_MOD, B, 1, 1)
    multi4 = multi.reshape(1, B, 1, 1)

    # DyRoutTrans fusion + NCE + SentiCLS in one launch.
    pred, nce = fusion_cls(feats, pooled, senti4, multi4, mask3_k, mask3_q,
                           params["fusion"], params["cls"], use_ratio)
    return pred, nce[0, 0]


# ----------------------------------------------------------------------------
if __name__ == "__main__":
    key = jax.random.PRNGKey(0)
    k_par, k_t, k_v, k_a, k_s = jax.random.split(key, 5)

    params = init_params(k_par)
    text = jax.random.normal(k_t, (BATCH, SEQ, D_TEXT), jnp.float32)
    video = jax.random.normal(k_v, (BATCH, SEQ, D_VIDEO), jnp.float32)
    audio = jax.random.normal(k_a, (BATCH, SEQ, D_AUDIO), jnp.float32)
    mask = jnp.ones((BATCH, SEQ), jnp.float32).at[1, -2:].set(0.0)
    multi_senti = jax.random.uniform(k_s, (BATCH, 1), jnp.float32, -1.0, 1.0)

    pred, nce = jax.jit(kmsa_forward)(params, text, video, audio, mask, multi_senti)
    jax.block_until_ready((pred, nce))
    assert pred.shape == (BATCH, 1) and nce.shape == ()
    assert bool(jnp.all(jnp.isfinite(pred))) and bool(jnp.isfinite(nce))
    print("KERNEL_OK")
</pallas_src>

<mosaic_0001>
module attributes {stable_mosaic.version = 11 : i64} {
  func.func @_encoder_kernel(%arg0: i32, %arg1: memref<1x2x8x32xf32, #tpu.memory_space<vmem>>, %arg2: memref<2x1x8xf32, #tpu.memory_space<vmem>>, %arg3: memref<2x8x1xf32, #tpu.memory_space<vmem>>, %arg4: memref<1x32x32xf32, #tpu.memory_space<vmem>>, %arg5: memref<1x1x32xf32, #tpu.memory_space<vmem>>, %arg6: memref<1x32x96xf32, #tpu.memory_space<vmem>>, %arg7: memref<1x32x32xf32, #tpu.memory_space<vmem>>, %arg8: memref<1x32x1xf32, #tpu.memory_space<vmem>>, %arg9: memref<1x1x1xf32, #tpu.memory_space<vmem>>, %arg10: memref<1x2x8x32xf32, #tpu.memory_space<vmem>>, %arg11: memref<1x2x32xf32, #tpu.memory_space<vmem>>, %arg12: memref<1x2x1xf32, #tpu.memory_space<vmem>>) attributes {dimension_semantics = [#tpu.dimension_semantics<parallel>], iteration_bounds = array<i64: 3>, scalar_prefetch = 0 : i64, scratch_operands = 0 : i64, tpu.core_type = #tpu.core_type<tc>, window_params = [{transform_indices = @transform_0, window_bounds = array<i64: 1, 2, 8, 32>}, {pipeline_mode = #tpu.pipeline_mode<synchronous>, transform_indices = @transform_1, window_bounds = array<i64: 2, 1, 8>}, {pipeline_mode = #tpu.pipeline_mode<synchronous>, transform_indices = @transform_2, window_bounds = array<i64: 2, 8, 1>}, {transform_indices = @transform_3, window_bounds = array<i64: 1, 32, 32>}, {transform_indices = @transform_4, window_bounds = array<i64: 1, 1, 32>}, {transform_indices = @transform_5, window_bounds = array<i64: 1, 32, 96>}, {transform_indices = @transform_6, window_bounds = array<i64: 1, 32, 32>}, {transform_indices = @transform_7, window_bounds = array<i64: 1, 32, 1>}, {transform_indices = @transform_8, window_bounds = array<i64: 1, 1, 1>}, {transform_indices = @transform_9, window_bounds = array<i64: 1, 2, 8, 32>}, {transform_indices = @transform_10, window_bounds = array<i64: 1, 2, 32>}, {transform_indices = @transform_11, window_bounds = array<i64: 1, 2, 1>}]} {
    %c0 = arith.constant 0 : index
    %c0_0 = arith.constant 0 : index
    %c0_1 = arith.constant 0 : index
    %c0_2 = arith.constant 0 : index
    %0 = vector.load %arg1[%c0, %c0_0, %c0_1, %c0_2] : memref<1x2x8x32xf32, #tpu.memory_space<vmem>>, vector<1x2x8x32xf32>
    %1 = vector.shape_cast %0 : vector<1x2x8x32xf32> to vector<2x8x32xf32>
    %c0_3 = arith.constant 0 : index
    %c0_4 = arith.constant 0 : index
    %c0_5 = arith.constant 0 : index
    %2 = vector.load %arg2[%c0_3, %c0_4, %c0_5] : memref<2x1x8xf32, #tpu.memory_space<vmem>>, vector<2x1x8xf32>
    %c0_6 = arith.constant 0 : index
    %c0_7 = arith.constant 0 : index
    %c0_8 = arith.constant 0 : index
    %3 = vector.load %arg3[%c0_6, %c0_7, %c0_8] : memref<2x8x1xf32, #tpu.memory_space<vmem>>, vector<2x8x1xf32>
    %4 = vector.shape_cast %1 : vector<2x8x32xf32> to vector<16x32xf32>
    %c0_9 = arith.constant 0 : index
    %c0_10 = arith.constant 0 : index
    %c0_11 = arith.constant 0 : index
    %5 = vector.load %arg4[%c0_9, %c0_10, %c0_11] : memref<1x32x32xf32, #tpu.memory_space<vmem>>, vector<1x32x32xf32>
    %6 = vector.shape_cast %5 : vector<1x32x32xf32> to vector<32x32xf32>
    %cst = arith.constant dense<0.000000e+00> : vector<16x32xf32>
    %7 = tpu.matmul %4, %6, %cst {dimension_numbers = #tpu.dot_dimension_numbers<[1], [0], [0], [1], [0, 0, 1, 1], [], []>} : vector<16x32xf32>, vector<32x32xf32>, vector<16x32xf32> -> vector<16x32xf32>
    %c0_12 = arith.constant 0 : index
    %c0_13 = arith.constant 0 : index
    %c0_14 = arith.constant 0 : index
    %8 = vector.load %arg5[%c0_12, %c0_13, %c0_14] : memref<1x1x32xf32, #tpu.memory_space<vmem>>, vector<1x1x32xf32>
    %9 = vector.shape_cast %8 : vector<1x1x32xf32> to vector<1x32xf32>
    %10 = vector.broadcast %9 : vector<1x32xf32> to vector<16x32xf32>
    %11 = arith.addf %7, %10 : vector<16x32xf32>
    %cst_15 = arith.constant 0.000000e+00 : f32
    %12 = vector.broadcast %cst_15 : f32 to vector<16x32xf32>
    %13 = arith.maximumf %11, %12 : vector<16x32xf32>
    %c0_16 = arith.constant 0 : index
    %c0_17 = arith.constant 0 : index
    %c0_18 = arith.constant 0 : index
    %14 = vector.load %arg6[%c0_16, %c0_17, %c0_18] : memref<1x32x96xf32, #tpu.memory_space<vmem>>, vector<1x32x96xf32>
    %15 = vector.shape_cast %14 : vector<1x32x96xf32> to vector<32x96xf32>
    %cst_19 = arith.constant dense<0.000000e+00> : vector<16x96xf32>
    %16 = tpu.matmul %13, %15, %cst_19 {dimension_numbers = #tpu.dot_dimension_numbers<[1], [0], [0], [1], [0, 0, 1, 1], [], []>} : vector<16x32xf32>, vector<32x96xf32>, vector<16x96xf32> -> vector<16x96xf32>
    %17 = vector.extract_strided_slice %16 {offsets = [0, 0], sizes = [16, 32], strides = [1, 1]} : vector<16x96xf32> to vector<16x32xf32>
    %18 = vector.shape_cast %17 : vector<16x32xf32> to vector<2x8x32xf32>
    %19 = vector.extract_strided_slice %16 {offsets = [0, 32], sizes = [16, 32], strides = [1, 1]} : vector<16x96xf32> to vector<16x32xf32>
    %20 = vector.shape_cast %19 : vector<16x32xf32> to vector<2x8x32xf32>
    %21 = vector.extract_strided_slice %16 {offsets = [0, 64], sizes = [16, 32], strides = [1, 1]} : vector<16x96xf32> to vector<16x32xf32>
    %22 = vector.shape_cast %21 : vector<16x32xf32> to vector<2x8x32xf32>
    %cst_20 = arith.constant 1.000000e+00 : f32
    %23 = vector.broadcast %cst_20 : f32 to vector<2x1x8xf32>
    %24 = arith.subf %23, %2 : vector<2x1x8xf32>
    %cst_21 = arith.constant -1.000000e+09 : f32
    %25 = vector.broadcast %cst_21 : f32 to vector<2x1x8xf32>
    %26 = arith.mulf %24, %25 : vector<2x1x8xf32>
    "tpu.trace_start"() <{level = 10 : i32, message = "bqd,bkd->bqk"}> : () -> ()
    %cst_22 = arith.constant dense<0.000000e+00> : vector<2x8x8xf32>
    %27 = tpu.matmul %18, %20, %cst_22 {dimension_numbers = #tpu.dot_dimension_numbers<[2], [2], [1], [1], [0, 0, 0, 1, 1, 1], [0], [0]>} : vector<2x8x32xf32>, vector<2x8x32xf32>, vector<2x8x8xf32> -> vector<2x8x8xf32>
    "tpu.trace_stop"() : () -> ()
    %cst_23 = arith.constant 0.176776692 : f32
    %28 = vector.broadcast %cst_23 : f32 to vector<2x8x8xf32>
    %29 = arith.mulf %27, %28 : vector<2x8x8xf32>
    %30 = vector.broadcast %26 : vector<2x1x8xf32> to vector<2x8x8xf32>
    %31 = arith.addf %29, %30 : vector<2x8x8xf32>
    %cst_24 = arith.constant dense<0xFF800000> : vector<2x8xf32>
    %32 = vector.multi_reduction <maximumf>, %31, %cst_24 [2] : vector<2x8x8xf32> to vector<2x8xf32>
    %33 = vector.shape_cast %32 : vector<2x8xf32> to vector<2x8x1xf32>
    %34 = vector.broadcast %33 : vector<2x8x1xf32> to vector<2x8x8xf32>
    %35 = arith.subf %31, %34 : vector<2x8x8xf32>
    %36 = math.exp %35 : vector<2x8x8xf32>
    %cst_25 = arith.constant dense<0.000000e+00> : vector<2x8xf32>
    %37 = vector.multi_reduction <add>, %36, %cst_25 [2] : vector<2x8x8xf32> to vector<2x8xf32>
    %38 = vector.shape_cast %37 : vector<2x8xf32> to vector<2x8x1xf32>
    %39 = tpu.reciprocal %38 {approx = true} : vector<2x8x1xf32> -> vector<2x8x1xf32>
    %40 = vector.broadcast %39 : vector<2x8x1xf32> to vector<2x8x8xf32>
    %41 = arith.mulf %36, %40 : vector<2x8x8xf32>
    "tpu.trace_start"() <{level = 10 : i32, message = "bqk,bkd->bqd"}> : () -> ()
    %cst_26 = arith.constant dense<0.000000e+00> : vector<2x8x32xf32>
    %42 = tpu.matmul %41, %22, %cst_26 {dimension_numbers = #tpu.dot_dimension_numbers<[2], [1], [1], [2], [0, 0, 0, 1, 1, 2], [0], [0]>} : vector<2x8x8xf32>, vector<2x8x32xf32>, vector<2x8x32xf32> -> vector<2x8x32xf32>
    "tpu.trace_stop"() : () -> ()
    %43 = vector.shape_cast %42 : vector<2x8x32xf32> to vector<16x32xf32>
    %c0_27 = arith.constant 0 : index
    %c0_28 = arith.constant 0 : index
    %c0_29 = arith.constant 0 : index
    %44 = vector.load %arg7[%c0_27, %c0_28, %c0_29] : memref<1x32x32xf32, #tpu.memory_space<vmem>>, vector<1x32x32xf32>
    %45 = vector.shape_cast %44 : vector<1x32x32xf32> to vector<32x32xf32>
    %cst_30 = arith.constant dense<0.000000e+00> : vector<16x32xf32>
    %46 = tpu.matmul %43, %45, %cst_30 {dimension_numbers = #tpu.dot_dimension_numbers<[1], [0], [0], [1], [0, 0, 1, 1], [], []>} : vector<16x32xf32>, vector<32x32xf32>, vector<16x32xf32> -> vector<16x32xf32>
    %47 = arith.addf %13, %46 : vector<16x32xf32>
    %48 = vector.shape_cast %47 : vector<16x32xf32> to vector<2x8x32xf32>
    %c0_31 = arith.constant 0 : index
    %c0_32 = arith.constant 0 : index
    %c0_33 = arith.constant 0 : index
    %c0_34 = arith.constant 0 : index
    %49 = vector.load %arg10[%c0_31, %c0_32, %c0_33, %c0_34] : memref<1x2x8x32xf32, #tpu.memory_space<vmem>>, vector<1x2x8x32xf32>
    %50 = vector.shape_cast %49 : vector<1x2x8x32xf32> to vector<2x8x32xf32>
    %51 = vector.shape_cast %48 : vector<2x8x32xf32> to vector<1x2x8x32xf32>
    tpu.vector_store %arg10[%c0_31, %c0_32, %c0_33, %c0_34], %51 {strides = array<i32>} : memref<1x2x8x32xf32, #tpu.memory_space<vmem>>, vector<1x2x8x32xf32>,
    %cst_35 = arith.constant dense<0.000000e+00> : vector<2x1xf32>
    %52 = vector.multi_reduction <add>, %3, %cst_35 [1] : vector<2x8x1xf32> to vector<2x1xf32>
    %cst_36 = arith.constant 9.99999997E-7 : f32
    %53 = vector.broadcast %cst_36 : f32 to vector<2x1xf32>
    %54 = arith.addf %52, %53 : vector<2x1xf32>
    %55 = vector.broadcast %3 : vector<2x8x1xf32> to vector<2x8x32xf32>
    %56 = arith.mulf %48, %55 : vector<2x8x32xf32>
    %cst_37 = arith.constant dense<0.000000e+00> : vector<2x32xf32>
    %57 = vector.multi_reduction <add>, %56, %cst_37 [1] : vector<2x8x32xf32> to vector<2x32xf32>
    %58 = vector.broadcast %54 : vector<2x1xf32> to vector<2x32xf32>
    %59 = arith.divf %57, %58 : vector<2x32xf32>
    %c0_38 = arith.constant 0 : index
    %c0_39 = arith.constant 0 : index
    %c0_40 = arith.constant 0 : index
    %60 = vector.load %arg11[%c0_38, %c0_39, %c0_40] : memref<1x2x32xf32, #tpu.memory_space<vmem>>, vector<1x2x32xf32>
    %61 = vector.shape_cast %60 : vector<1x2x32xf32> to vector<2x32xf32>
    %62 = vector.shape_cast %59 : vector<2x32xf32> to vector<1x2x32xf32>
    tpu.vector_store %arg11[%c0_38, %c0_39, %c0_40], %62 {strides = array<i32>} : memref<1x2x32xf32, #tpu.memory_space<vmem>>, vector<1x2x32xf32>,
    %c0_41 = arith.constant 0 : index
    %c0_42 = arith.constant 0 : index
    %c0_43 = arith.constant 0 : index
    %63 = vector.load %arg8[%c0_41, %c0_42, %c0_43] : memref<1x32x1xf32, #tpu.memory_space<vmem>>, vector<1x32x1xf32>
    %64 = vector.shape_cast %63 : vector<1x32x1xf32> to vector<32x1xf32>
    %cst_44 = arith.constant dense<0.000000e+00> : vector<2x1xf32>
    %65 = tpu.matmul %59, %64, %cst_44 {dimension_numbers = #tpu.dot_dimension_numbers<[1], [0], [0], [1], [0, 0, 1, 1], [], []>} : vector<2x32xf32>, vector<32x1xf32>, vector<2x1xf32> -> vector<2x1xf32>
    %c0_45 = arith.constant 0 : index
    %c0_46 = arith.constant 0 : index
    %c0_47 = arith.constant 0 : index
    %66 = vector.load %arg9[%c0_45, %c0_46, %c0_47] : memref<1x1x1xf32, #tpu.memory_space<vmem>>, vector<1x1x1xf32>
    %67 = vector.shape_cast %66 : vector<1x1x1xf32> to vector<1x1xf32>
    %68 = vector.broadcast %67 : vector<1x1xf32> to vector<2x1xf32>
    %69 = arith.addf %65, %68 : vector<2x1xf32>
    %70 = math.tanh %69 : vector<2x1xf32>
    %c0_48 = arith.constant 0 : index
    %c0_49 = arith.constant 0 : index
    %c0_50 = arith.constant 0 : index
    %71 = vector.load %arg12[%c0_48, %c0_49, %c0_50] : memref<1x2x1xf32, #tpu.memory_space<vmem>>, vector<1x2x1xf32>
    %72 = vector.shape_cast %71 : vector<1x2x1xf32> to vector<2x1xf32>
    %73 = vector.shape_cast %70 : vector<2x1xf32> to vector<1x2x1xf32>
    tpu.vector_store %arg12[%c0_48, %c0_49, %c0_50], %73 {strides = array<i32>} : memref<1x2x1xf32, #tpu.memory_space<vmem>>, vector<1x2x1xf32>,
    return
  }
  func.func @transform_0(%arg0: i32) -> (i32, i32, i32, i32) {
    %c0_i32 = arith.constant 0 : i32
    %c0_i32_0 = arith.constant 0 : i32
    %c0_i32_1 = arith.constant 0 : i32
    %c0_i32_2 = arith.constant 0 : i32
    return %arg0, %c0_i32, %c0_i32_0, %c0_i32_1 : i32, i32, i32, i32
  }
  func.func @transform_1(%arg0: i32) -> (i32, i32, i32) {
    %c0_i32 = arith.constant 0 : i32
    %c0_i32_0 = arith.constant 0 : i32
    %c0_i32_1 = arith.constant 0 : i32
    %c0_i32_2 = arith.constant 0 : i32
    return %c0_i32, %c0_i32_0, %c0_i32_1 : i32, i32, i32
  }
  func.func @transform_2(%arg0: i32) -> (i32, i32, i32) {
    %c0_i32 = arith.constant 0 : i32
    %c0_i32_0 = arith.constant 0 : i32
    %c0_i32_1 = arith.constant 0 : i32
    %c0_i32_2 = arith.constant 0 : i32
    return %c0_i32, %c0_i32_0, %c0_i32_1 : i32, i32, i32
  }
  func.func @transform_3(%arg0: i32) -> (i32, i32, i32) {
    %c0_i32 = arith.constant 0 : i32
    %c0_i32_0 = arith.constant 0 : i32
    %c0_i32_1 = arith.constant 0 : i32
    return %arg0, %c0_i32, %c0_i32_0 : i32, i32, i32
  }
  func.func @transform_4(%arg0: i32) -> (i32, i32, i32) {
    %c0_i32 = arith.constant 0 : i32
    %c0_i32_0 = arith.constant 0 : i32
    %c0_i32_1 = arith.constant 0 : i32
    return %arg0, %c0_i32, %c0_i32_0 : i32, i32, i32
  }
  func.func @transform_5(%arg0: i32) -> (i32, i32, i32) {
    %c0_i32 = arith.constant 0 : i32
    %c0_i32_0 = arith.constant 0 : i32
    %c0_i32_1 = arith.constant 0 : i32
    return %arg0, %c0_i32, %c0_i32_0 : i32, i32, i32
  }
  func.func @transform_6(%arg0: i32) -> (i32, i32, i32) {
    %c0_i32 = arith.constant 0 : i32
    %c0_i32_0 = arith.constant 0 : i32
    %c0_i32_1 = arith.constant 0 : i32
    return %arg0, %c0_i32, %c0_i32_0 : i32, i32, i32
  }
  func.func @transform_7(%arg0: i32) -> (i32, i32, i32) {
    %c0_i32 = arith.constant 0 : i32
    %c0_i32_0 = arith.constant 0 : i32
    %c0_i32_1 = arith.constant 0 : i32
    return %arg0, %c0_i32, %c0_i32_0 : i32, i32, i32
  }
  func.func @transform_8(%arg0: i32) -> (i32, i32, i32) {
    %c0_i32 = arith.constant 0 : i32
    %c0_i32_0 = arith.constant 0 : i32
    %c0_i32_1 = arith.constant 0 : i32
    return %arg0, %c0_i32, %c0_i32_0 : i32, i32, i32
  }
  func.func @transform_9(%arg0: i32) -> (i32, i32, i32, i32) {
    %c0_i32 = arith.constant 0 : i32
    %c0_i32_0 = arith.constant 0 : i32
    %c0_i32_1 = arith.constant 0 : i32
    %c0_i32_2 = arith.constant 0 : i32
    return %arg0, %c0_i32, %c0_i32_0, %c0_i32_1 : i32, i32, i32, i32
  }
  func.func @transform_10(%arg0: i32) -> (i32, i32, i32) {
    %c0_i32 = arith.constant 0 : i32
    %c0_i32_0 = arith.constant 0 : i32
    %c0_i32_1 = arith.constant 0 : i32
    return %arg0, %c0_i32, %c0_i32_0 : i32, i32, i32
  }
  func.func @transform_11(%arg0: i32) -> (i32, i32, i32) {
    %c0_i32 = arith.constant 0 : i32
    %c0_i32_0 = arith.constant 0 : i32
    %c0_i32_1 = arith.constant 0 : i32
    return %arg0, %c0_i32, %c0_i32_0 : i32, i32, i32
  }
}

module attributes {stable_mosaic.version = 11 : i64} {
  func.func @_fusion_cls_kernel(%arg0: i32, %arg1: memref<3x2x8x32xf32, #tpu.memory_space<vmem>>, %arg2: memref<3x2x32xf32, #tpu.memory_space<vmem>>, %arg3: memref<3x2x1x1xf32, #tpu.memory_space<vmem>>, %arg4: memref<1x2x1x1xf32, #tpu.memory_space<vmem>>, %arg5: memref<2x1x24xf32, #tpu.memory_space<vmem>>, %arg6: memref<2x24x1xf32, #tpu.memory_space<vmem>>, %arg7: memref<32x96xf32, #tpu.memory_space<vmem>>, %arg8: memref<32x32xf32, #tpu.memory_space<vmem>>, %arg9: memref<32x32xf32, #tpu.memory_space<vmem>>, %arg10: memref<1x32xf32, #tpu.memory_space<vmem>>, %arg11: memref<32x1xf32, #tpu.memory_space<vmem>>, %arg12: memref<1x1xf32, #tpu.memory_space<vmem>>, %arg13: memref<2x1xf32, #tpu.memory_space<vmem>>, %arg14: memref<1x1xf32, #tpu.memory_space<vmem>>) attributes {dimension_semantics = [#tpu.dimension_semantics<arbitrary>], iteration_bounds = array<i64: 1>, scalar_prefetch = 0 : i64, scratch_operands = 0 : i64, tpu.core_type = #tpu.core_type<tc>, window_params = [{pipeline_mode = #tpu.pipeline_mode<synchronous>, transform_indices = @transform_0, window_bounds = array<i64: 3, 2, 8, 32>}, {pipeline_mode = #tpu.pipeline_mode<synchronous>, transform_indices = @transform_1, window_bounds = array<i64: 3, 2, 32>}, {pipeline_mode = #tpu.pipeline_mode<synchronous>, transform_indices = @transform_2, window_bounds = array<i64: 3, 2, 1, 1>}, {pipeline_mode = #tpu.pipeline_mode<synchronous>, transform_indices = @transform_3, window_bounds = array<i64: 1, 2, 1, 1>}, {pipeline_mode = #tpu.pipeline_mode<synchronous>, transform_indices = @transform_4, window_bounds = array<i64: 2, 1, 24>}, {pipeline_mode = #tpu.pipeline_mode<synchronous>, transform_indices = @transform_5, window_bounds = array<i64: 2, 24, 1>}, {pipeline_mode = #tpu.pipeline_mode<synchronous>, transform_indices = @transform_6, window_bounds = array<i64: 32, 96>}, {pipeline_mode = #tpu.pipeline_mode<synchronous>, transform_indices = @transform_7, window_bounds = array<i64: 32, 32>}, {pipeline_mode = #tpu.pipeline_mode<synchronous>, transform_indices = @transform_8, window_bounds = array<i64: 32, 32>}, {pipeline_mode = #tpu.pipeline_mode<synchronous>, transform_indices = @transform_9, window_bounds = array<i64: 1, 32>}, {pipeline_mode = #tpu.pipeline_mode<synchronous>, transform_indices = @transform_10, window_bounds = array<i64: 32, 1>}, {pipeline_mode = #tpu.pipeline_mode<synchronous>, transform_indices = @transform_11, window_bounds = array<i64: 1, 1>}, {pipeline_mode = #tpu.pipeline_mode<synchronous>, transform_indices = @transform_12, window_bounds = array<i64: 2, 1>}, {pipeline_mode = #tpu.pipeline_mode<synchronous>, transform_indices = @transform_13, window_bounds = array<i64: 1, 1>}]} {
    %c0 = arith.constant 0 : index
    %c0_0 = arith.constant 0 : index
    %c0_1 = arith.constant 0 : index
    %c0_2 = arith.constant 0 : index
    %0 = vector.load %arg1[%c0, %c0_0, %c0_1, %c0_2] : memref<3x2x8x32xf32, #tpu.memory_space<vmem>>, vector<3x2x8x32xf32>
    %c0_3 = arith.constant 0 : index
    %c0_4 = arith.constant 0 : index
    %c0_5 = arith.constant 0 : index
    %1 = vector.load %arg5[%c0_3, %c0_4, %c0_5] : memref<2x1x24xf32, #tpu.memory_space<vmem>>, vector<2x1x24xf32>
    %c0_6 = arith.constant 0 : index
    %c0_7 = arith.constant 0 : index
    %c0_8 = arith.constant 0 : index
    %2 = vector.load %arg6[%c0_6, %c0_7, %c0_8] : memref<2x24x1xf32, #tpu.memory_space<vmem>>, vector<2x24x1xf32>
    %c0_9 = arith.constant 0 : index
    %c0_10 = arith.constant 0 : index
    %c0_11 = arith.constant 0 : index
    %c0_12 = arith.constant 0 : index
    %3 = vector.load %arg3[%c0_9, %c0_10, %c0_11, %c0_12] : memref<3x2x1x1xf32, #tpu.memory_space<vmem>>, vector<3x2x1x1xf32>
    %c0_13 = arith.constant 0 : index
    %c0_14 = arith.constant 0 : index
    %c0_15 = arith.constant 0 : index
    %c0_16 = arith.constant 0 : index
    %4 = vector.load %arg4[%c0_13, %c0_14, %c0_15, %c0_16] : memref<1x2x1x1xf32, #tpu.memory_space<vmem>>, vector<1x2x1x1xf32>
    %5 = vector.broadcast %4 : vector<1x2x1x1xf32> to vector<3x2x1x1xf32>
    %6 = arith.subf %3, %5 : vector<3x2x1x1xf32>
    %7 = math.absf %6 : vector<3x2x1x1xf32>
    %cst = arith.constant 0.000000e+00 : f32
    %8 = vector.broadcast %cst : f32 to vector<3x2x1x1xf32>
    %9 = arith.subf %8, %7 : vector<3x2x1x1xf32>
    %cst_17 = arith.constant 1.000000e+01 : f32
    %10 = vector.broadcast %cst_17 : f32 to vector<3x2x1x1xf32>
    %11 = arith.mulf %9, %10 : vector<3x2x1x1xf32>
    %cst_18 = arith.constant dense<0xFF800000> : vector<2x1x1xf32>
    %12 = vector.multi_reduction <maximumf>, %11, %cst_18 [0] : vector<3x2x1x1xf32> to vector<2x1x1xf32>
    %13 = vector.shape_cast %12 : vector<2x1x1xf32> to vector<1x2x1x1xf32>
    %14 = vector.broadcast %13 : vector<1x2x1x1xf32> to vector<3x2x1x1xf32>
    %15 = arith.subf %11, %14 : vector<3x2x1x1xf32>
    %16 = math.exp %15 : vector<3x2x1x1xf32>
    %cst_19 = arith.constant dense<0.000000e+00> : vector<2x1x1xf32>
    %17 = vector.multi_reduction <add>, %16, %cst_19 [0] : vector<3x2x1x1xf32> to vector<2x1x1xf32>
    %18 = vector.shape_cast %17 : vector<2x1x1xf32> to vector<1x2x1x1xf32>
    %19 = tpu.reciprocal %18 {approx = true} : vector<1x2x1x1xf32> -> vector<1x2x1x1xf32>
    %20 = vector.broadcast %19 : vector<1x2x1x1xf32> to vector<3x2x1x1xf32>
    %21 = arith.mulf %16, %20 : vector<3x2x1x1xf32>
    %22 = vector.broadcast %21 : vector<3x2x1x1xf32> to vector<3x2x8x32xf32>
    %23 = arith.mulf %0, %22 : vector<3x2x8x32xf32>
    %24 = vector.extract_strided_slice %23 {offsets = [0, 0, 0, 0], sizes = [1, 2, 8, 32], strides = [1, 1, 1, 1]} : vector<3x2x8x32xf32> to vector<1x2x8x32xf32>
    %25 = vector.shape_cast %24 : vector<1x2x8x32xf32> to vector<2x8x32xf32>
    %26 = vector.extract_strided_slice %23 {offsets = [1, 0, 0, 0], sizes = [1, 2, 8, 32], strides = [1, 1, 1, 1]} : vector<3x2x8x32xf32> to vector<1x2x8x32xf32>
    %27 = vector.shape_cast %26 : vector<1x2x8x32xf32> to vector<2x8x32xf32>
    %28 = vector.extract_strided_slice %23 {offsets = [2, 0, 0, 0], sizes = [1, 2, 8, 32], strides = [1, 1, 1, 1]} : vector<3x2x8x32xf32> to vector<1x2x8x32xf32>
    %29 = vector.shape_cast %28 : vector<1x2x8x32xf32> to vector<2x8x32xf32>
    %30 = tpu.concatenate %25, %27, %29 in 1 : vector<2x8x32xf32>, vector<2x8x32xf32>, vector<2x8x32xf32> -> vector<2x24x32xf32>
    %31 = vector.shape_cast %30 : vector<2x24x32xf32> to vector<48x32xf32>
    %c0_20 = arith.constant 0 : index
    %c0_21 = arith.constant 0 : index
    %32 = vector.load %arg7[%c0_20, %c0_21] : memref<32x96xf32, #tpu.memory_space<vmem>>, vector<32x96xf32>
    %cst_22 = arith.constant dense<0.000000e+00> : vector<48x96xf32>
    %33 = tpu.matmul %31, %32, %cst_22 {dimension_numbers = #tpu.dot_dimension_numbers<[1], [0], [0], [1], [0, 0, 1, 1], [], []>} : vector<48x32xf32>, vector<32x96xf32>, vector<48x96xf32> -> vector<48x96xf32>
    %34 = vector.extract_strided_slice %33 {offsets = [0, 0], sizes = [48, 32], strides = [1, 1]} : vector<48x96xf32> to vector<48x32xf32>
    %35 = vector.shape_cast %34 : vector<48x32xf32> to vector<2x24x32xf32>
    %36 = vector.extract_strided_slice %33 {offsets = [0, 32], sizes = [48, 32], strides = [1, 1]} : vector<48x96xf32> to vector<48x32xf32>
    %37 = vector.shape_cast %36 : vector<48x32xf32> to vector<2x24x32xf32>
    %38 = vector.extract_strided_slice %33 {offsets = [0, 64], sizes = [48, 32], strides = [1, 1]} : vector<48x96xf32> to vector<48x32xf32>
    %39 = vector.shape_cast %38 : vector<48x32xf32> to vector<2x24x32xf32>
    %cst_23 = arith.constant 1.000000e+00 : f32
    %40 = vector.broadcast %cst_23 : f32 to vector<2x1x24xf32>
    %41 = arith.subf %40, %1 : vector<2x1x24xf32>
    %cst_24 = arith.constant -1.000000e+09 : f32
    %42 = vector.broadcast %cst_24 : f32 to vector<2x1x24xf32>
    %43 = arith.mulf %41, %42 : vector<2x1x24xf32>
    "tpu.trace_start"() <{level = 10 : i32, message = "bqd,bkd->bqk"}> : () -> ()
    %cst_25 = arith.constant dense<0.000000e+00> : vector<2x24x24xf32>
    %44 = tpu.matmul %35, %37, %cst_25 {dimension_numbers = #tpu.dot_dimension_numbers<[2], [2], [1], [1], [0, 0, 0, 1, 1, 1], [0], [0]>} : vector<2x24x32xf32>, vector<2x24x32xf32>, vector<2x24x24xf32> -> vector<2x24x24xf32>
    "tpu.trace_stop"() : () -> ()
    %cst_26 = arith.constant 0.176776692 : f32
    %45 = vector.broadcast %cst_26 : f32 to vector<2x24x24xf32>
    %46 = arith.mulf %44, %45 : vector<2x24x24xf32>
    %47 = vector.broadcast %43 : vector<2x1x24xf32> to vector<2x24x24xf32>
    %48 = arith.addf %46, %47 : vector<2x24x24xf32>
    %cst_27 = arith.constant dense<0xFF800000> : vector<2x24xf32>
    %49 = vector.multi_reduction <maximumf>, %48, %cst_27 [2] : vector<2x24x24xf32> to vector<2x24xf32>
    %50 = vector.shape_cast %49 : vector<2x24xf32> to vector<2x24x1xf32>
    %51 = vector.broadcast %50 : vector<2x24x1xf32> to vector<2x24x24xf32>
    %52 = arith.subf %48, %51 : vector<2x24x24xf32>
    %53 = math.exp %52 : vector<2x24x24xf32>
    %cst_28 = arith.constant dense<0.000000e+00> : vector<2x24xf32>
    %54 = vector.multi_reduction <add>, %53, %cst_28 [2] : vector<2x24x24xf32> to vector<2x24xf32>
    %55 = vector.shape_cast %54 : vector<2x24xf32> to vector<2x24x1xf32>
    %56 = tpu.reciprocal %55 {approx = true} : vector<2x24x1xf32> -> vector<2x24x1xf32>
    %57 = vector.broadcast %56 : vector<2x24x1xf32> to vector<2x24x24xf32>
    %58 = arith.mulf %53, %57 : vector<2x24x24xf32>
    "tpu.trace_start"() <{level = 10 : i32, message = "bqk,bkd->bqd"}> : () -> ()
    %cst_29 = arith.constant dense<0.000000e+00> : vector<2x24x32xf32>
    %59 = tpu.matmul %58, %39, %cst_29 {dimension_numbers = #tpu.dot_dimension_numbers<[2], [1], [1], [2], [0, 0, 0, 1, 1, 2], [0], [0]>} : vector<2x24x24xf32>, vector<2x24x32xf32>, vector<2x24x32xf32> -> vector<2x24x32xf32>
    "tpu.trace_stop"() : () -> ()
    %60 = vector.shape_cast %59 : vector<2x24x32xf32> to vector<48x32xf32>
    %c0_30 = arith.constant 0 : index
    %c0_31 = arith.constant 0 : index
    %61 = vector.load %arg8[%c0_30, %c0_31] : memref<32x32xf32, #tpu.memory_space<vmem>>, vector<32x32xf32>
    %cst_32 = arith.constant dense<0.000000e+00> : vector<48x32xf32>
    %62 = tpu.matmul %60, %61, %cst_32 {dimension_numbers = #tpu.dot_dimension_numbers<[1], [0], [0], [1], [0, 0, 1, 1], [], []>} : vector<48x32xf32>, vector<32x32xf32>, vector<48x32xf32> -> vector<48x32xf32>
    %63 = arith.addf %31, %62 : vector<48x32xf32>
    %64 = vector.shape_cast %63 : vector<48x32xf32> to vector<2x24x32xf32>
    %cst_33 = arith.constant dense<0.000000e+00> : vector<2x1xf32>
    %65 = vector.multi_reduction <add>, %2, %cst_33 [1] : vector<2x24x1xf32> to vector<2x1xf32>
    %cst_34 = arith.constant 9.99999997E-7 : f32
    %66 = vector.broadcast %cst_34 : f32 to vector<2x1xf32>
    %67 = arith.addf %65, %66 : vector<2x1xf32>
    %68 = vector.broadcast %2 : vector<2x24x1xf32> to vector<2x24x32xf32>
    %69 = arith.mulf %64, %68 : vector<2x24x32xf32>
    %cst_35 = arith.constant dense<0.000000e+00> : vector<2x32xf32>
    %70 = vector.multi_reduction <add>, %69, %cst_35 [1] : vector<2x24x32xf32> to vector<2x32xf32>
    %71 = vector.broadcast %67 : vector<2x1xf32> to vector<2x32xf32>
    %72 = arith.divf %70, %71 : vector<2x32xf32>
    %c0_36 = arith.constant 0 : index
    %c0_37 = arith.constant 0 : index
    %73 = vector.load %arg9[%c0_36, %c0_37] : memref<32x32xf32, #tpu.memory_space<vmem>>, vector<32x32xf32>
    %cst_38 = arith.constant dense<0.000000e+00> : vector<2x32xf32>
    %74 = tpu.matmul %72, %73, %cst_38 {dimension_numbers = #tpu.dot_dimension_numbers<[1], [0], [0], [1], [0, 0, 1, 1], [], []>} : vector<2x32xf32>, vector<32x32xf32>, vector<2x32xf32> -> vector<2x32xf32>
    %c0_39 = arith.constant 0 : index
    %c0_40 = arith.constant 0 : index
    %75 = vector.load %arg10[%c0_39, %c0_40] : memref<1x32xf32, #tpu.memory_space<vmem>>, vector<1x32xf32>
    %76 = vector.broadcast %75 : vector<1x32xf32> to vector<2x32xf32>
    %77 = arith.addf %74, %76 : vector<2x32xf32>
    %cst_41 = arith.constant 0.000000e+00 : f32
    %78 = vector.broadcast %cst_41 : f32 to vector<2x32xf32>
    %79 = arith.maximumf %77, %78 : vector<2x32xf32>
    %c0_42 = arith.constant 0 : index
    %c0_43 = arith.constant 0 : index
    %80 = vector.load %arg11[%c0_42, %c0_43] : memref<32x1xf32, #tpu.memory_space<vmem>>, vector<32x1xf32>
    %cst_44 = arith.constant dense<0.000000e+00> : vector<2x1xf32>
    %81 = tpu.matmul %79, %80, %cst_44 {dimension_numbers = #tpu.dot_dimension_numbers<[1], [0], [0], [1], [0, 0, 1, 1], [], []>} : vector<2x32xf32>, vector<32x1xf32>, vector<2x1xf32> -> vector<2x1xf32>
    %c0_45 = arith.constant 0 : index
    %c0_46 = arith.constant 0 : index
    %82 = vector.load %arg12[%c0_45, %c0_46] : memref<1x1xf32, #tpu.memory_space<vmem>>, vector<1x1xf32>
    %83 = vector.broadcast %82 : vector<1x1xf32> to vector<2x1xf32>
    %84 = arith.addf %81, %83 : vector<2x1xf32>
    %c0_47 = arith.constant 0 : index
    %c0_48 = arith.constant 0 : index
    %85 = vector.load %arg13[%c0_47, %c0_48] : memref<2x1xf32, #tpu.memory_space<vmem>>, vector<2x1xf32>
    tpu.vector_store %arg13[%c0_47, %c0_48], %84 {strides = array<i32>} : memref<2x1xf32, #tpu.memory_space<vmem>>, vector<2x1xf32>,
    %c0_49 = arith.constant 0 : index
    %c0_50 = arith.constant 0 : index
    %c0_51 = arith.constant 0 : index
    %86 = vector.load %arg2[%c0_49, %c0_50, %c0_51] : memref<3x2x32xf32, #tpu.memory_space<vmem>>, vector<3x2x32xf32>
    %87 = vector.extract_strided_slice %86 {offsets = [0, 0, 0], sizes = [1, 2, 32], strides = [1, 1, 1]} : vector<3x2x32xf32> to vector<1x2x32xf32>
    %88 = vector.shape_cast %87 : vector<1x2x32xf32> to vector<2x32xf32>
    %89 = vector.extract_strided_slice %86 {offsets = [1, 0, 0], sizes = [1, 2, 32], strides = [1, 1, 1]} : vector<3x2x32xf32> to vector<1x2x32xf32>
    %90 = vector.shape_cast %89 : vector<1x2x32xf32> to vector<2x32xf32>
    %91 = arith.mulf %88, %88 : vector<2x32xf32>
    %cst_52 = arith.constant dense<0.000000e+00> : vector<2xf32>
    %92 = vector.multi_reduction <add>, %91, %cst_52 [1] : vector<2x32xf32> to vector<2xf32>
    %93 = vector.shape_cast %92 : vector<2xf32> to vector<2x1xf32>
    %cst_53 = arith.constant 9.99999993E-9 : f32
    %94 = vector.broadcast %cst_53 : f32 to vector<2x1xf32>
    %95 = arith.addf %93, %94 : vector<2x1xf32>
    %96 = math.rsqrt %95 : vector<2x1xf32>
    %97 = vector.broadcast %96 : vector<2x1xf32> to vector<2x32xf32>
    %98 = arith.mulf %88, %97 : vector<2x32xf32>
    %99 = arith.mulf %90, %90 : vector<2x32xf32>
    %cst_54 = arith.constant dense<0.000000e+00> : vector<2xf32>
    %100 = vector.multi_reduction <add>, %99, %cst_54 [1] : vector<2x32xf32> to vector<2xf32>
    %101 = vector.shape_cast %100 : vector<2xf32> to vector<2x1xf32>
    %cst_55 = arith.constant 9.99999993E-9 : f32
    %102 = vector.broadcast %cst_55 : f32 to vector<2x1xf32>
    %103 = arith.addf %101, %102 : vector<2x1xf32>
    %104 = math.rsqrt %103 : vector<2x1xf32>
    %105 = vector.broadcast %104 : vector<2x1xf32> to vector<2x32xf32>
    %106 = arith.mulf %90, %105 : vector<2x32xf32>
    %107 = tpu.transpose %106, [1, 0] : vector<2x32xf32> -> vector<32x2xf32>
    %cst_56 = arith.constant dense<0.000000e+00> : vector<2x2xf32>
    %108 = tpu.matmul %98, %107, %cst_56 {dimension_numbers = #tpu.dot_dimension_numbers<[1], [0], [0], [1], [0, 0, 1, 1], [], []>} : vector<2x32xf32>, vector<32x2xf32>, vector<2x2xf32> -> vector<2x2xf32>
    %cst_57 = arith.constant 7.000000e-02 : f32
    %109 = vector.broadcast %cst_57 : f32 to vector<2x2xf32>
    %110 = arith.divf %108, %109 : vector<2x2xf32>
    %cst_58 = arith.constant dense<0xFF800000> : vector<2xf32>
    %111 = vector.multi_reduction <maximumf>, %110, %cst_58 [1] : vector<2x2xf32> to vector<2xf32>
    %112 = vector.shape_cast %111 : vector<2xf32> to vector<2x1xf32>
    %113 = vector.broadcast %112 : vector<2x1xf32> to vector<2x2xf32>
    %114 = arith.subf %110, %113 : vector<2x2xf32>
    %115 = math.exp %114 : vector<2x2xf32>
    %cst_59 = arith.constant dense<0.000000e+00> : vector<2xf32>
    %116 = vector.multi_reduction <add>, %115, %cst_59 [1] : vector<2x2xf32> to vector<2xf32>
    %117 = vector.shape_cast %116 : vector<2xf32> to vector<2x1xf32>
    %118 = math.log %117 : vector<2x1xf32>
    %119 = arith.addf %118, %112 : vector<2x1xf32>
    %120 = tpu.iota {dimensions = array<i32: 0>} : vector<2x2xi32>
    %121 = tpu.iota {dimensions = array<i32: 1>} : vector<2x2xi32>
    %122 = arith.cmpi eq, %120, %121 : vector<2x2xi32>
    %cst_60 = arith.constant 0.000000e+00 : f32
    %123 = vector.broadcast %cst_60 : f32 to vector<2x2xf32>
    %124 = arith.select %122, %110, %123 : vector<2x2xi1>, vector<2x2xf32>
    %cst_61 = arith.constant dense<0.000000e+00> : vector<2xf32>
    %125 = vector.multi_reduction <add>, %124, %cst_61 [1] : vector<2x2xf32> to vector<2xf32>
    %126 = vector.shape_cast %125 : vector<2xf32> to vector<2x1xf32>
    %127 = arith.subf %119, %126 : vector<2x1xf32>
    %128 = vector.shape_cast %127 : vector<2x1xf32> to vector<1x2x1xf32>
    %cst_62 = arith.constant dense<0.000000e+00> : vector<1xf32>
    %129 = vector.multi_reduction <add>, %128, %cst_62 [1, 2] : vector<1x2x1xf32> to vector<1xf32>
    %130 = vector.shape_cast %129 : vector<1xf32> to vector<1x1x1xf32>
    %131 = vector.extract %130[0, 0, 0] : f32 from vector<1x1x1xf32>
    %cst_63 = arith.constant 2.000000e+00 : f32
    %132 = arith.divf %131, %cst_63 : f32
    %133 = vector.extract_strided_slice %86 {offsets = [0, 0, 0], sizes = [1, 2, 32], strides = [1, 1, 1]} : vector<3x2x32xf32> to vector<1x2x32xf32>
    %134 = vector.shape_cast %133 : vector<1x2x32xf32> to vector<2x32xf32>
    %135 = vector.extract_strided_slice %86 {offsets = [2, 0, 0], sizes = [1, 2, 32], strides = [1, 1, 1]} : vector<3x2x32xf32> to vector<1x2x32xf32>
    %136 = vector.shape_cast %135 : vector<1x2x32xf32> to vector<2x32xf32>
    %137 = arith.mulf %134, %134 : vector<2x32xf32>
    %cst_64 = arith.constant dense<0.000000e+00> : vector<2xf32>
    %138 = vector.multi_reduction <add>, %137, %cst_64 [1] : vector<2x32xf32> to vector<2xf32>
    %139 = vector.shape_cast %138 : vector<2xf32> to vector<2x1xf32>
    %cst_65 = arith.constant 9.99999993E-9 : f32
    %140 = vector.broadcast %cst_65 : f32 to vector<2x1xf32>
    %141 = arith.addf %139, %140 : vector<2x1xf32>
    %142 = math.rsqrt %141 : vector<2x1xf32>
    %143 = vector.broadcast %142 : vector<2x1xf32> to vector<2x32xf32>
    %144 = arith.mulf %134, %143 : vector<2x32xf32>
    %145 = arith.mulf %136, %136 : vector<2x32xf32>
    %cst_66 = arith.constant dense<0.000000e+00> : vector<2xf32>
    %146 = vector.multi_reduction <add>, %145, %cst_66 [1] : vector<2x32xf32> to vector<2xf32>
    %147 = vector.shape_cast %146 : vector<2xf32> to vector<2x1xf32>
    %cst_67 = arith.constant 9.99999993E-9 : f32
    %148 = vector.broadcast %cst_67 : f32 to vector<2x1xf32>
    %149 = arith.addf %147, %148 : vector<2x1xf32>
    %150 = math.rsqrt %149 : vector<2x1xf32>
    %151 = vector.broadcast %150 : vector<2x1xf32> to vector<2x32xf32>
    %152 = arith.mulf %136, %151 : vector<2x32xf32>
    %153 = tpu.transpose %152, [1, 0] : vector<2x32xf32> -> vector<32x2xf32>
    %cst_68 = arith.constant dense<0.000000e+00> : vector<2x2xf32>
    %154 = tpu.matmul %144, %153, %cst_68 {dimension_numbers = #tpu.dot_dimension_numbers<[1], [0], [0], [1], [0, 0, 1, 1], [], []>} : vector<2x32xf32>, vector<32x2xf32>, vector<2x2xf32> -> vector<2x2xf32>
    %cst_69 = arith.constant 7.000000e-02 : f32
    %155 = vector.broadcast %cst_69 : f32 to vector<2x2xf32>
    %156 = arith.divf %154, %155 : vector<2x2xf32>
    %cst_70 = arith.constant dense<0xFF800000> : vector<2xf32>
    %157 = vector.multi_reduction <maximumf>, %156, %cst_70 [1] : vector<2x2xf32> to vector<2xf32>
    %158 = vector.shape_cast %157 : vector<2xf32> to vector<2x1xf32>
    %159 = vector.broadcast %158 : vector<2x1xf32> to vector<2x2xf32>
    %160 = arith.subf %156, %159 : vector<2x2xf32>
    %161 = math.exp %160 : vector<2x2xf32>
    %cst_71 = arith.constant dense<0.000000e+00> : vector<2xf32>
    %162 = vector.multi_reduction <add>, %161, %cst_71 [1] : vector<2x2xf32> to vector<2xf32>
    %163 = vector.shape_cast %162 : vector<2xf32> to vector<2x1xf32>
    %164 = math.log %163 : vector<2x1xf32>
    %165 = arith.addf %164, %158 : vector<2x1xf32>
    %166 = tpu.iota {dimensions = array<i32: 0>} : vector<2x2xi32>
    %167 = tpu.iota {dimensions = array<i32: 1>} : vector<2x2xi32>
    %168 = arith.cmpi eq, %166, %167 : vector<2x2xi32>
    %cst_72 = arith.constant 0.000000e+00 : f32
    %169 = vector.broadcast %cst_72 : f32 to vector<2x2xf32>
    %170 = arith.select %168, %156, %169 : vector<2x2xi1>, vector<2x2xf32>
    %cst_73 = arith.constant dense<0.000000e+00> : vector<2xf32>
    %171 = vector.multi_reduction <add>, %170, %cst_73 [1] : vector<2x2xf32> to vector<2xf32>
    %172 = vector.shape_cast %171 : vector<2xf32> to vector<2x1xf32>
    %173 = arith.subf %165, %172 : vector<2x1xf32>
    %174 = vector.shape_cast %173 : vector<2x1xf32> to vector<1x2x1xf32>
    %cst_74 = arith.constant dense<0.000000e+00> : vector<1xf32>
    %175 = vector.multi_reduction <add>, %174, %cst_74 [1, 2] : vector<1x2x1xf32> to vector<1xf32>
    %176 = vector.shape_cast %175 : vector<1xf32> to vector<1x1x1xf32>
    %177 = vector.extract %176[0, 0, 0] : f32 from vector<1x1x1xf32>
    %cst_75 = arith.constant 2.000000e+00 : f32
    %178 = arith.divf %177, %cst_75 : f32
    %179 = arith.addf %132, %178 : f32
    %cst_76 = arith.constant 5.000000e-01 : f32
    %180 = arith.mulf %cst_76, %179 : f32
    %181 = vector.broadcast %180 : f32 to vector<1x1xf32>
    %c0_77 = arith.constant 0 : index
    %c0_78 = arith.constant 0 : index
    %182 = vector.load %arg14[%c0_77, %c0_78] : memref<1x1xf32, #tpu.memory_space<vmem>>, vector<1x1xf32>
    tpu.vector_store %arg14[%c0_77, %c0_78], %181 {strides = array<i32>} : memref<1x1xf32, #tpu.memory_space<vmem>>, vector<1x1xf32>,
    return
  }
  func.func @transform_0(%arg0: i32) -> (i32, i32, i32, i32) {
    %c0_i32 = arith.constant 0 : i32
    %c0_i32_0 = arith.constant 0 : i32
    %c0_i32_1 = arith.constant 0 : i32
    %c0_i32_2 = arith.constant 0 : i32
    %c0_i32_3 = arith.constant 0 : i32
    return %c0_i32, %c0_i32_0, %c0_i32_1, %c0_i32_2 : i32, i32, i32, i32
  }
  func.func @transform_1(%arg0: i32) -> (i32, i32, i32) {
    %c0_i32 = arith.constant 0 : i32
    %c0_i32_0 = arith.constant 0 : i32
    %c0_i32_1 = arith.constant 0 : i32
    %c0_i32_2 = arith.constant 0 : i32
    return %c0_i32, %c0_i32_0, %c0_i32_1 : i32, i32, i32
  }
  func.func @transform_2(%arg0: i32) -> (i32, i32, i32, i32) {
    %c0_i32 = arith.constant 0 : i32
    %c0_i32_0 = arith.constant 0 : i32
    %c0_i32_1 = arith.constant 0 : i32
    %c0_i32_2 = arith.constant 0 : i32
    %c0_i32_3 = arith.constant 0 : i32
    return %c0_i32, %c0_i32_0, %c0_i32_1, %c0_i32_2 : i32, i32, i32, i32
  }
  func.func @transform_3(%arg0: i32) -> (i32, i32, i32, i32) {
    %c0_i32 = arith.constant 0 : i32
    %c0_i32_0 = arith.constant 0 : i32
    %c0_i32_1 = arith.constant 0 : i32
    %c0_i32_2 = arith.constant 0 : i32
    %c0_i32_3 = arith.constant 0 : i32
    return %c0_i32, %c0_i32_0, %c0_i32_1, %c0_i32_2 : i32, i32, i32, i32
  }
  func.func @transform_4(%arg0: i32) -> (i32, i32, i32) {
    %c0_i32 = arith.constant 0 : i32
    %c0_i32_0 = arith.constant 0 : i32
    %c0_i32_1 = arith.constant 0 : i32
    %c0_i32_2 = arith.constant 0 : i32
    return %c0_i32, %c0_i32_0, %c0_i32_1 : i32, i32, i32
  }
  func.func @transform_5(%arg0: i32) -> (i32, i32, i32) {
    %c0_i32 = arith.constant 0 : i32
    %c0_i32_0 = arith.constant 0 : i32
    %c0_i32_1 = arith.constant 0 : i32
    %c0_i32_2 = arith.constant 0 : i32
    return %c0_i32, %c0_i32_0, %c0_i32_1 : i32, i32, i32
  }
  func.func @transform_6(%arg0: i32) -> (i32, i32) {
    %c0_i32 = arith.constant 0 : i32
    %c0_i32_0 = arith.constant 0 : i32
    %c0_i32_1 = arith.constant 0 : i32
    return %c0_i32, %c0_i32_0 : i32, i32
  }
  func.func @transform_7(%arg0: i32) -> (i32, i32) {
    %c0_i32 = arith.constant 0 : i32
    %c0_i32_0 = arith.constant 0 : i32
    %c0_i32_1 = arith.constant 0 : i32
    return %c0_i32, %c0_i32_0 : i32, i32
  }
  func.func @transform_8(%arg0: i32) -> (i32, i32) {
    %c0_i32 = arith.constant 0 : i32
    %c0_i32_0 = arith.constant 0 : i32
    %c0_i32_1 = arith.constant 0 : i32
    return %c0_i32, %c0_i32_0 : i32, i32
  }
  func.func @transform_9(%arg0: i32) -> (i32, i32) {
    %c0_i32 = arith.constant 0 : i32
    %c0_i32_0 = arith.constant 0 : i32
    %c0_i32_1 = arith.constant 0 : i32
    return %c0_i32, %c0_i32_0 : i32, i32
  }
  func.func @transform_10(%arg0: i32) -> (i32, i32) {
    %c0_i32 = arith.constant 0 : i32
    %c0_i32_0 = arith.constant 0 : i32
    %c0_i32_1 = arith.constant 0 : i32
    return %c0_i32, %c0_i32_0 : i32, i32
  }
  func.func @transform_11(%arg0: i32) -> (i32, i32) {
    %c0_i32 = arith.constant 0 : i32
    %c0_i32_0 = arith.constant 0 : i32
    %c0_i32_1 = arith.constant 0 : i32
    return %c0_i32, %c0_i32_0 : i32, i32
  }
  func.func @transform_12(%arg0: i32) -> (i32, i32) {
    %c0_i32 = arith.constant 0 : i32
    %c0_i32_0 = arith.constant 0 : i32
    %c0_i32_1 = arith.constant 0 : i32
    return %c0_i32, %c0_i32_0 : i32, i32
  }
  func.func @transform_13(%arg0: i32) -> (i32, i32) {
    %c0_i32 = arith.constant 0 : i32
    %c0_i32_0 = arith.constant 0 : i32
    %c0_i32_1 = arith.constant 0 : i32
    return %c0_i32, %c0_i32_0 : i32, i32
  }
}

</mosaic_0001>

<bundles_post_ra>
// kernel: kmsa_forward.2
= control target key start
LH: loop header
LB: loop body
LE: loop exit
PB: predicated region body
PF: predicated region fallthrough
CT: control target
= control target key end

     0   :  { %s1744_s17 = smov 0   ;;  %s1863_s0 = inlined_call_operand.vmem [shape: f32[3,2,8,32], index: 0, kind: input, shape index: {}]   ;;  %s1864_s1 = inlined_call_operand.vmem [shape: f32[2,1,8], index: 1, kind: input, shape index: {}]   ;;  %s1865_s2 = inlined_call_operand.vmem [shape: f32[2,8,1], index: 2, kind: input, shape index: {}]   ;;  %s1866_s3 = inlined_call_operand.vmem [shape: f32[3,32,32], index: 3, kind: input, shape index: {}]   ;;  %s1867_s4 = inlined_call_operand.vmem [shape: f32[3,1,32], index: 4, kind: input, shape index: {}]   ;;  %s1868_s5 = inlined_call_operand.vmem [shape: f32[3,32,96], index: 5, kind: input, shape index: {}]   ;;  %s1869_s6 = inlined_call_operand.vmem [shape: f32[3,32,32], index: 6, kind: input, shape index: {}]   ;;  %s1870_s7 = inlined_call_operand.vmem [shape: f32[3,32,1], index: 7, kind: input, shape index: {}]   ;;  %s1871_s8 = inlined_call_operand.vmem [shape: f32[3,1,1], index: 8, kind: input, shape index: {}]   ;;  %s1872_s9 = inlined_call_operand.vmem [shape: f32[3,2,8,32], index: 9, kind: output, shape index: {0}]   ;;  %s1873_s10 = inlined_call_operand.vmem [shape: f32[3,2,32], index: 10, kind: output, shape index: {1}]   ;;  %s1874_s11 = inlined_call_operand.vmem [shape: f32[3,2,1], index: 11, kind: output, shape index: {2}]  }
   0x1 LB: > { %s1473_s18 = sadd.s32 4294967295, %s1676_s17   ;;  %p1477_p0 = scmp.ge.s32.totalorder %s1676_s17, 1  ;;  %s1676_s17 = sphi %s1744_s17, %s22_s17  }
   0x2   : > { %p398_p1 = scmp.lt.s32.totalorder %s1676_s17, 4 }
   0x4   : > { %p399_p2 = pnand %p1477_p0, %p398_p1 }
   0x5   : > { %p472_p3 = scmp.lt.s32.totalorder (!%p399_p2), %s1473_s18, 2  ;;  %vm533_vm0 = vcmask (!%p399_p2), 261120   ;;  %v1678_v21 = vmov (!%p399_p2), 0.0   ;;  %vm1679_vm1 = vmmov (!%p399_p2), 0   ;;  %s1680_s14 = smov (!%p399_p2), 96   ;;  %v864_v26 = vlaneseq (!%p399_p2) }
   0x6   : > { %402 = sbr.rel (%p399_p2) target bundleno = 1781 (0x6f5), region = 56  ;;  %v518_v27 = vld [vmem:[%s1864_s1] sm:$0x1] (!%p399_p2)  ;;  %v519_v30 = vld [vmem:[%s1864_s1 + $0x1] sm:$0x1] (!%p399_p2)  ;;  %vm876_vm2 = vcmask (!%p399_p2), 64512  }
   0x7   : > { %v702_v28 = vsub.f32 (!%p399_p2), 1.0, %v518_v27  ;;  %v865_v29 = vshrl.u32 (!%p399_p2), %v864_v26, 7  ;;  %v703_v33 = vsub.f32 (!%p399_p2), 1.0, %v519_v30  ;;  %vm1140_vm3 = vcmask (!%p399_p2), 7168  }
   0x8   : > { %vm1199_vm4 = vcmask (!%p399_p2), 1041409   ;;  %vm1202_vm5 = vcmask (!%p399_p2), 254976   ;;  %vm1288_vm6 = vcmask (!%p399_p2), 1024  }
   0x9   : > { %v704_v31 = vmul.f32 (!%p399_p2), -1e+09, %v702_v28  ;;  %v866_v32 = vsub.s32 (!%p399_p2), 0, %v865_v29  ;;  %v705_v35 = vmul.f32 (!%p399_p2), -1e+09, %v703_v33 }
   0xb   : > { %v867_v34 = vrot.slane (!%p399_p2), %v704_v31, %v866_v32  ;;  %v871_v40 = vrot.slane (!%p399_p2), %v705_v35, %v866_v32 }
   0xd   : > { %s1876_s18 = smov (!%p472_p3, %s1473_s18), 2 }
   0xe   : > { %s1755_s19 = sshll.u32 %s1876_s18, 5  ;;  %s1509_s20 = sshll.u32 %s1876_s18, 4 }
   0xf   : > { %s481_s23 = scalar_lea.vmem %s1866_s3, %s1755_s19  ;;  %s476_s26 = scalar_lea.vmem %s1863_s0, %s1509_s20 }
  0x10   : > { %v522_v0 = vld [vmem:[%s481_s23] sm:$0xff]  ;;  %v523_v1 = vld [vmem:[%s481_s23 + $0x8] sm:$0xff]  ;;  %v524_v2 = vld [vmem:[%s481_s23 + $0x10] sm:$0xff]  ;;  %s489_s29 = scalar_lea.vmem %s1868_s5, %s1755_s19  ;;  %s484_s13 = scalar_lea.vmem %s1867_s4, %s1876_s18 }
  0x11   : > { %v1610_v3 = vpack.c.bf16 %v523_v1, %v522_v0  ;;  %v525_v4 = vld [vmem:[%s481_s23 + $0x18] sm:$0xff]  ;;  %v516_v5 = vld [vmem:[%s476_s26] sm:$0xff]  ;;  %v618_v8 = vld [vmem:[%s489_s29 + $0x8] sm:$0xff]  ;;  %s1681_s23 = smov 64   ;;  %s507_s21 = scalar_lea.vmem %s1872_s9, %s1509_s20 }
  0x12   : > { %v1614_v6 = vpack.c.bf16 %v525_v4, %v524_v2  ;;  %1554 = vmatprep.mubr.msk.f32.mxu0 %vm533_vm0, %v516_v5  ;;  %v617_v7 = vld [vmem:[%s489_s29] sm:$0xff]  ;;  %v517_v10 = vld [vmem:[%s476_s26 + $0x8] sm:$0xff]  ;;  %v619_v11 = vld [vmem:[%s489_s29 + $0x10] sm:$0xff]  ;;  %s494_s26 = scalar_lea.vmem %s1869_s6, %s1755_s19 }
  0x13   : > { %1611 = vmatprep.subr.bf16.mxu0 %v1610_v3  ;;  %v1618_v9 = vpack.c.bf16 %v618_v8, %v617_v7  ;;  %v620_v12 = vld [vmem:[%s489_s29 + $0x18] sm:$0xff]  ;;  %v1492_v14 = vld [vmem:[%s484_s13] ss:$0 sm:$0xff]  ;;  %v1052_v59 = vld [vmem:[%s494_s26 + $0x8] sm:$0xff] }
  0x14   : > { %1613 = vmatpush3.bf16.msra.mxu0 %v1610_v3  ;;  %v1622_v13 = vpack.c.bf16 %v620_v12, %v619_v11  ;;  %v1051_v58 = vld [vmem:[%s494_s26] sm:$0xff]  ;;  %v1053_v4 = vld [vmem:[%s494_s26 + $0x10] sm:$0xff]  ;;  %v1054_v5 = vld [vmem:[%s494_s26 + $0x18] sm:$0xff]  ;;  %s502_s26 = scalar_lea.vmem %s1871_s8, %s1876_s18 }
  0x15   : > { %1615 = vmatprep.subr.bf16.mxu0 %v1614_v6  ;;  %1619 = vmatprep.subr.bf16.mxu1 %v1618_v9  ;;  %v1626_v61 = vpack.c.bf16 %v1052_v59, %v1051_v58  ;;  %v520_v7 = vld [vmem:[%s1865_s2] sm:$0xff]  ;;  %v521_v8 = vld [vmem:[%s1865_s2 + $0x8] sm:$0xff] }
  0x16   : > { %1621 = vmatpush3.bf16.msra.mxu1 %v1618_v9  ;;  %v1682_v9 = vmov 0   ;;  %v1148_v11 = vsel %vm1140_vm3, %v521_v8, 0.0 }
  0x17   : > { %1623 = vmatprep.subr.bf16.mxu1 %v1622_v13  ;;  %1654 = vset.pattern.permute.xlu1 %v1682_v9 }
  0x18   : > { %1617 = vmatpush3.bf16.msra.mxu0 %v1614_v6  ;;  %v1630_v6 = vpack.c.bf16 %v1054_v5, %v1053_v4  ;;  %1655 = vset.pattern.permute.xlu0 %v1682_v9 }
  0x19   : > { %1568 = vmatprep.subr.mxu0 %v1678_v21 }
  0x1a   : > { %1625 = vmatpush3.bf16.msra.mxu1 %v1622_v13  ;;  %v1149_v13 = vrot.slane %v1148_v11, 4 }
  0x1b   : > { %1555 = vmatmul.mubr.msk.f32.vlgmr.msra.gmra.mrb[0].mxu0 %vm533_vm0, %v517_v10  ;;  %1573 = vmatprep.subr.mxu1 %v1678_v21  ;;  %v1141_v10 = vsel %vm1140_vm3, %v520_v7, 0.0 }
  0x1c   : > { %1570 = vmatprep.mubr.msk.f32.mxu0 %vm1679_vm1, %v1678_v21  ;;  %v1142_v12 = vrot.slane %v1141_v10, 4 }
  0xee   : > { %v1556_v15 = vpop.f32.mrb[0].mxu0 }
  0xef   : > { %v1777_v16 = vadd.f32 %v1556_v15, %v1492_v14  ;;  %v606_v17 = vpop.f32.mrb[1].mxu0  ;;  %v1150_v15 = vadd.f32 %v1149_v13, %v1148_v11 }
  0xf0   : > { %v1779_v18 = vadd.f32 %v1492_v14, %v606_v17  ;;  %v1143_v14 = vadd.f32 %v1142_v12, %v1141_v10 }
  0xf1   : > { %v616_v20 = vmax.f32 %v1777_v16, 0.0 }
  0xf2   : > { %v615_v19 = vmax.f32 %v1779_v18, 0.0  ;;  %v1144_v17 = vrot.slane %v1143_v14, 2 }
  0xf4   : > { %1565 = vmatprep.mubr.msk.f32.mxu1 %vm533_vm0, %v615_v19 }
  0xf5   : > { %1566 = vmatmul.mubr.msk.f32.vlgmr.msra.gmra.mrb[0].mxu1 %vm533_vm0, %v616_v20 }
  0xf6   : > { %1575 = vmatprep.mubr.msk.f32.mxu1 %vm1679_vm1, %v1678_v21 }
 0x1c8   : > { %v1567_v22 = vpop.f32.mrb[0].mxu1 }
 0x1c9   : > { %v693_v23 = vpop.f32.mrb[1].mxu1 }
 0x1ca   : > { %707 = vrot.lane.b32.xlu0 %v693_v23, %s1680_s14 }
 0x1ce   : > { %784 = vrot.lane.b32.xlu0 %v1567_v22, %s1680_s14  ;;  %s499_s14 = scalar_lea.vmem %s1870_s7, %s1755_s19  ;;  %s1490_s19 = sshll.u32 %s1876_s18, 1 }
 0x1cf   : > { %v1205_v35 = vld [vmem:[%s499_s14 + $0x8] sm:$0xff]  ;;  %s515_s29 = scalar_lea.vmem %s1874_s11, %s1490_s19 }
 0x23c   : > { %v708_v24 = vpop.permute.xlu0 %707 }
 0x23d   : > { %1569 = vmatpush3.xpose.msk.msra.mxu0 %vm533_vm0, %v708_v24 }
 0x23e   : > { %1578 = vmatprep.subr.mxu0 %v1678_v21 }
 0x240   : > { %1571 = vmatmul.mubr.msk.f32.vlgmr.msra.gmra.mrb[2].mxu0 %vm533_vm0, %v693_v23  ;;  %v785_v25 = vpop.permute.xlu0 %784 }
 0x241   : > { %1574 = vmatpush3.xpose.msk.msra.mxu1 %vm533_vm0, %v785_v25  ;;  %1580 = vmatprep.mubr.msk.f32.mxu0 %vm1679_vm1, %v1678_v21 }
 0x242   : > { %1583 = vmatprep.subr.mxu1 %v1678_v21 }
 0x244   : > { %1576 = vmatmul.mubr.msk.f32.vlgmr.msra.gmra.mrb[2].mxu1 %vm533_vm0, %v1567_v22 }
 0x245   : > { %1585 = vmatprep.mubr.msk.f32.mxu1 %vm1679_vm1, %v1678_v21 }
 0x313   : > { %v779_v36 = vpop.f32.mrb[2].mxu0 }
 0x314   : > { %v860_v37 = vmul.f32 0.17677669, %v779_v36  ;;  %v1572_v38 = vpop.f32.mrb[3].mxu0 }
 0x315   : > { %v1206_v38 = vld [vmem:[%s499_s14 + $0x10] sm:$0xff] }
 0x316   : > { %v874_v39 = vadd.f32 %v867_v34, %v860_v37  ;;  %v1204_v34 = vld [vmem:[%s499_s14] sm:$0xff]  ;;  %v1683_v37 = vmov 0.0|0.0  }
 0x317   : > { %v856_v41 = vpop.f32.mrb[2].mxu1  ;;  %v1635_v36 = vpack.c.bf16 %v1205_v35, %v1204_v34 }
 0x318   : > { %v861_v42 = vmul.f32 0.17677669, %v856_v41  ;;  %v1577_v43 = vpop.f32.mrb[3].mxu1  ;;  %v877_v44 = vsel %vm876_vm2, %v874_v39, -inf }
 0x319   : > { %878 = vmax.xlane.f32.xlu1 %v877_v44 }
 0x31a   : > { %v875_v45 = vadd.f32 %v871_v40, %v861_v42 }
 0x31c   : > { %v880_v46 = vsel %vm876_vm2, %v875_v45, -inf }
 0x31d   : > { %881 = vmax.xlane.f32.xlu1 %v880_v46 }
 0x3a6   : > { %v879_v47 = vpop.xlane.xlu1 %878 }
 0x3a7   : > { %v883_v48 = vsub.f32 %v874_v39, %v879_v47  ;;  %v1207_v39 = vld [vmem:[%s499_s14 + $0x18] sm:$0xff] }
 0x3a8   : > { %v1638_v40 = vpack.c.bf16 %v1207_v39, %v1206_v38 }
 0x3a9   : > { %v885_v49 = vmul.f32 1.442695, %v883_v48 }
 0x3aa   : > { %v882_v50 = vpop.xlane.xlu1 %881 }
 0x3ab   : > { %1656 = vpow2.f32 %v885_v49  ;;  %v884_v51 = vsub.f32 %v875_v45, %v882_v50 }
 0x3ad   : > { %v887_v52 = vmul.f32 1.442695, %v884_v51 }
 0x3af   : > { %1658 = vpow2.f32 %v887_v52 }
 0x3b5   : > { %v1657_v53 = vpop.eup %1656 }
 0x3b6   : > { %v889_v54 = vsel %vm876_vm2, %v1657_v53, 0.0 }
 0x3b7   : > { %890 = vadd.xlane.f32.xlu0 %v889_v54 }
 0x3b9   : > { %v1659_v55 = vpop.eup %1658 }
 0x3ba   : > { %v892_v56 = vsel %vm876_vm2, %v1659_v55, 0.0 }
 0x3bb   : > { %893 = vadd.xlane.f32.xlu1 %v892_v56 }
 0x3cc   : > { %899 = vrot.lane.b32.xlu1 %v693_v23, %s1681_s23 }
 0x3d0   : > { %975 = vrot.lane.b32.xlu1 %v1567_v22, %s1681_s23  ;;  %v1145_v22 = vadd.f32 %v1144_v17, %v1143_v14  ;;  %s511_s23 = scalar_lea.vmem %s1873_s10, %s1490_s19 }
 0x3d2   : > { %v1146_v25 = vrot.slane %v1145_v22, 1 }
 0x3d4   : > { %1159 = vperm.xlu1 %1654, %v520_v7   ;;  %v1147_v27 = vadd.f32 %v1146_v25, %v1145_v22 }
 0x3d6   : > { %v1155_v29 = vadd.f32 1e-06, %v1147_v27 }
 0x3d8   : > { %1164 = vperm.xlu1 %1654, %v521_v8   ;;  %1185 = vperm.xlu0 %1655, %v1155_v29  }
 0x444   : > { %v891_v57 = vpop.xlane.xlu0 %890 }
 0x445   : > { %1660 = vrcp.f32 %v891_v57 }
 0x448   : > { %v894_v60 = vpop.xlane.xlu1 %893 }
 0x449   : > { %1662 = vrcp.f32 %v894_v60 }
 0x44c   : > { %v900_v62 = vpop.permute.xlu1 %899 }
 0x44d   : > { %1579 = vmatpush3.msra.mxu0 %v900_v62 }
 0x44e   : > { %1627 = vmatprep.subr.bf16.mxu0 %v1626_v61 }
 0x44f   : > { %v1661_v63 = vpop.eup %1660 }
 0x450   : > { %v897_v0 = vmul.f32 %v1661_v63, %v1657_v53  ;;  %v976_v1 = vpop.permute.xlu1 %975 }
 0x451   : > { %1584 = vmatpush3.msra.mxu1 %v976_v1 }
 0x452   : > { %1581 = vmatmul.mubr.msk.f32.vlgmr.msra.gmra.mrb[4].mxu0 %vm876_vm2, %v897_v0  ;;  %1634 = vmatprep.subr.bf16.mxu1 %v1683_v37 }
 0x453   : > { %v1663_v2 = vpop.eup %1662  ;;  %1629 = vmatpush3.bf16.msra.mxu0 %v1626_v61 }
 0x454   : > { %v898_v3 = vmul.f32 %v1663_v2, %v1659_v55  ;;  %1631 = vmatprep.subr.bf16.mxu0 %v1630_v6  ;;  %v1160_v41 = vpop.permute.xlu1 %1159  ;;  %v1505_v2 = vld [vmem:[%s502_s26] ss:$0 sm:$0xff] }
 0x456   : > { %1586 = vmatmul.mubr.msk.f32.vlgmr.msra.gmra.mrb[4].mxu1 %vm876_vm2, %v898_v3 }
 0x457   : > { %1607 = vmatprep.mubr.msk.f32.mxu1 %vm1679_vm1, %v1678_v21  ;;  %1633 = vmatpush3.bf16.msra.mxu0 %v1630_v6  ;;  %v1151_v21 = vrot.slane %v1150_v15, 2  ;;  %v1186_v48 = vpop.permute.xlu0 %1185 }
 0x458   : > { %1636 = vmatpush3.bf16.msra.mxu1 %v1635_v36  ;;  %v1165_v42 = vpop.permute.xlu1 %1164  ;;  %1664 = vrcp.f32 %v1186_v48 }
 0x459   : > { %v1152_v23 = vadd.f32 %v1151_v21, %v1150_v15  ;;  %1637 = vmatprep.subr.bf16.mxu1 %v1683_v37 }
 0x45b   : > { %v1153_v24 = vrot.slane %v1152_v23, 1 }
 0x45c   : > { %1639 = vmatpush3.bf16.msra.mxu1 %v1638_v40 }
 0x45d   : > { %v1154_v26 = vadd.f32 %v1153_v24, %v1152_v23 }
 0x45f   : > { %v1156_v28 = vadd.f32 1e-06, %v1154_v26 }
 0x461   : > { %1190 = vperm.xlu1 %1654, %v1156_v28  }
 0x462   : > { %v1665_v59 = vpop.eup %1664 }
 0x4e0   : > { %v1191_v49 = vpop.permute.xlu1 %1190 }
 0x4e1   : > { %1666 = vrcp.f32 %v1191_v49 }
 0x4eb   : > { %v1667_v61 = vpop.eup %1666 }
 0x525   : > { %v971_v30 = vpop.f32.mrb[4].mxu0 }
 0x526   : > { %v1582_v31 = vpop.f32.mrb[5].mxu0  ;;  %1596 = vmatprep.mubr.msk.f32.mxu0 %vm533_vm0, %v971_v30 }
 0x529   : > { %v1047_v32 = vpop.f32.mrb[4].mxu1 }
 0x52a   : > { %v1587_v33 = vpop.f32.mrb[5].mxu1  ;;  %1597 = vmatmul.mubr.msk.f32.vlgmr.msra.gmra.mrb[6].mxu0 %vm533_vm0, %v1047_v32 }
 0x5fd   : > { %v1598_v43 = vpop.f32.mrb[6].mxu0 }
 0x5fe   : > { %v1137_v44 = vadd.f32 %v1598_v43, %v616_v20  ;;  %v1127_v45 = vpop.f32.mrb[7].mxu0 }
 0x5ff   : > { %v1136_v46 = vadd.f32 %v1127_v45, %v615_v19 }
 0x600   : > { %1139 = vst.msk [vmem:[%s507_s21 + $0x8] sm:$0xff] %vm533_vm0, %v1137_v44  ;;  %v1168_v47 = vmul.f32 %v1165_v42, %v1137_v44 }
 0x601   : > { %1138 = vst.msk [vmem:[%s507_s21] sm:$0xff] %vm533_vm0, %v1136_v46  ;;  %v1167_v50 = vmul.f32 %v1160_v41, %v1136_v46 }
 0x602   : > { %v1176_v51 = vsel %vm533_vm0, %v1168_v47, 0.0 }
 0x603   : > { %v1177_v52 = vrot.slane %v1176_v51, 4  ;;  %v1169_v53 = vsel %vm533_vm0, %v1167_v50, 0.0 }
 0x604   : > { %v1170_v16 = vrot.slane %v1169_v53, 4 }
 0x605   : > { %v1178_v20 = vadd.f32 %v1177_v52, %v1176_v51 }
 0x606   : > { %v1171_v18 = vadd.f32 %v1170_v16, %v1169_v53 }
 0x607   : > { %v1179_v19 = vrot.slane %v1178_v20, 2 }
 0x608   : > { %v1172_v54 = vrot.slane %v1171_v18, 2 }
 0x609   : > { %v1180_v55 = vadd.f32 %v1179_v19, %v1178_v20 }
 0x60a   : > { %v1173_v56 = vadd.f32 %v1172_v54, %v1171_v18 }
 0x60b   : > { %v1181_v57 = vrot.slane %v1180_v55, 1 }
 0x60c   : > { %v1174_v58 = vrot.slane %v1173_v56, 1 }
 0x60d   : > { %v1182_v60 = vadd.f32 %v1181_v57, %v1180_v55 }
 0x60e   : > { %v1175_v62 = vadd.f32 %v1174_v58, %v1173_v56 }
 0x60f   : > { %v1196_v63 = vmul.f32 %v1667_v61, %v1182_v60 }
 0x610   : > { %v1194_v0 = vmul.f32 %v1665_v59, %v1175_v62 }
 0x612   : > { %v1200_v1 = vsel %vm1199_vm4, %v1196_v63, %v1194_v0 }
 0x613   : > { %1203 = vst.msk [vmem:[%s511_s23] sm:$0x3] %vm1202_vm5, %v1200_v1  ;;  %1608 = vmatmul.mubr.msk.f32.vlgmr.msra.gmra.mrb[6].mxu1 %vm533_vm0, %v1200_v1 }
 0x6e6   : > { %v1283_v3 = vpop.f32.mrb[6].mxu1 }
 0x6e7   : > { %v1284_v4 = vadd.f32 %v1505_v2, %v1283_v3  ;;  %v1609_v5 = vpop.f32.mrb[7].mxu1 }
 0x6e9   : > { %1668 = vtanh.f32 %v1284_v4 }
 0x6f3   : > { %v1669_v6 = vpop.eup %1668 }
 0x6f4   : > { %1289 = vst.msk [vmem:[%s515_s29] sm:$0x3] %vm1288_vm6, %v1669_v6 }
 0x6f5 PF: > { %s22_s17 = sadd.s32 1, %s1676_s17  }
 0x6f6   : > { %p19_p4 = scmp.ge.s32.totalorder %s22_s17, 5  }
 0x6f8   :  { %21 = sbr.rel (!%p19_p4) target bundleno = 1 (0x1), region = 128 }

// kernel: kmsa_forward.3
= control target key start
LH: loop header
LB: loop body
LE: loop exit
PB: predicated region body
PF: predicated region fallthrough
CT: control target
= control target key end

     0   :  { %s2309_s0 = inlined_call_operand.vmem [shape: f32[3,2,8,32], index: 0, kind: input, shape index: {}]   ;;  %s2310_s1 = inlined_call_operand.vmem [shape: f32[3,2,32], index: 1, kind: input, shape index: {}]   ;;  %s2311_s2 = inlined_call_operand.vmem [shape: f32[3,2,1,1], index: 2, kind: input, shape index: {}]   ;;  %s2312_s3 = inlined_call_operand.vmem [shape: f32[1,2,1,1], index: 3, kind: input, shape index: {}]   ;;  %s2313_s4 = inlined_call_operand.vmem [shape: f32[2,1,24], index: 4, kind: input, shape index: {}]   ;;  %s2314_s5 = inlined_call_operand.vmem [shape: f32[2,24,1], index: 5, kind: input, shape index: {}]   ;;  %s2315_s6 = inlined_call_operand.vmem [shape: f32[32,96], index: 6, kind: input, shape index: {}]   ;;  %s2316_s7 = inlined_call_operand.vmem [shape: f32[32,32], index: 7, kind: input, shape index: {}]   ;;  %s2317_s8 = inlined_call_operand.vmem [shape: f32[32,32], index: 8, kind: input, shape index: {}]   ;;  %s2318_s9 = inlined_call_operand.vmem [shape: f32[1,32], index: 9, kind: input, shape index: {}]   ;;  %s2319_s10 = inlined_call_operand.vmem [shape: f32[32,1], index: 10, kind: input, shape index: {}]   ;;  %s2320_s11 = inlined_call_operand.<no memory space> [shape: f32[1,1], index: 11, kind: input, shape index: {}]   ;;  %s2321_s12 = inlined_call_operand.vmem [shape: f32[2,1], index: 12, kind: output, shape index: {0}]   ;;  %s2322_s13 = inlined_call_operand.hbm [shape: f32[1,1], index: 13, kind: output, shape index: {1}]  }
   0x1   :  { %v19_v0 = vstv %s2320_s11 }
   0x2   :  { %20 = vst [vmem:[#allocation2] sm:$0x1] %v19_v0 }
   0x3   :  { %v60_v1 = vld [vmem:[%s2311_s2] sm:$0x1]  ;;  %v62_v2 = vld [vmem:[%s2311_s2 + $0x2] sm:$0x1]  ;;  %v1852_v3 = vmov 0   ;;  %v92_v13 = vlaneseq  ;;  %v204_v15 = vld [vmem:[%s2315_s6 + $0x8] sm:$0xff] }
   0x4   :  { %1749 = vset.pattern.permute.xlu1 %v1852_v3  ;;  %1748 = vset.pattern.permute.xlu0 %v1852_v3  ;;  %v64_v4 = vld [vmem:[%s2311_s2 + $0x4] sm:$0x1]  ;;  %v66_v5 = vld [vmem:[%s2312_s3] sm:$0x1]  ;;  %v61_v6 = vld [vmem:[%s2311_s2 + $0x1] sm:$0x1] }
   0x5   :  { %v68_v7 = vsub.f32 %v60_v1, %v66_v5  ;;  %v70_v8 = vsub.f32 %v62_v2, %v66_v5  ;;  %v72_v9 = vsub.f32 %v64_v4, %v66_v5  ;;  %v63_v10 = vld [vmem:[%s2311_s2 + $0x3] sm:$0x1]  ;;  %v65_v11 = vld [vmem:[%s2311_s2 + $0x5] sm:$0x1]  ;;  %v67_v14 = vld [vmem:[%s2312_s3 + $0x1] sm:$0x1] }
   0x6   :  { %v203_v12 = vld [vmem:[%s2315_s6] sm:$0xff] }
   0x7   :  { %21 = vsyncpa [#allocation4], 0  ;;  %v74_v16 = vand.u32 2147483647, %v68_v7  ;;  %v76_v17 = vand.u32 2147483647, %v70_v8  ;;  %v69_v19 = vsub.f32 %v61_v6, %v67_v14  ;;  %v71_v20 = vsub.f32 %v63_v10, %v67_v14 }
   0x8   :  { %v78_v18 = vand.u32 2147483647, %v72_v9  ;;  %v73_v21 = vsub.f32 %v65_v11, %v67_v14  ;;  %v1695_v22 = vpack.c.bf16 %v204_v15, %v203_v12  ;;  %vm1963_vm0 = vcmp.lt.s32.totalorder %v92_v13, 1  ;;  %s1858_s25 = smov [#allocation3]  }
   0x9   :  { %v80_v23 = vsub.f32 0.0, %v74_v16  ;;  %v82_v24 = vsub.f32 0.0, %v76_v17  ;;  %v75_v26 = vand.u32 2147483647, %v69_v19  ;;  %v77_v28 = vand.u32 2147483647, %v71_v20 }
   0xa   :  { %v84_v25 = vsub.f32 0.0, %v78_v18  ;;  %v79_v29 = vand.u32 2147483647, %v73_v21  ;;  %1696 = vmatprep.subr.bf16.mxu0 %v1695_v22  ;;  %vm124_vm1 = vcmask 0   ;;  %v1986_v14 = vshrl.u32 %v92_v13, 7  ;;  %s1463_s26 = sshll.u32 %s1858_s25, 4  ;;  %s1464_s26 = int_to_ptr.vmem [resolvable:$true] %s1463_s26 }
   0xb   :  { %v86_v30 = vmul.f32 10.0, %v80_v23  ;;  %v88_v31 = vmul.f32 10.0, %v82_v24  ;;  %v81_v33 = vsub.f32 0.0, %v75_v26  ;;  %1698 = vmatpush3.bf16.msra.mxu0 %v1695_v22  ;;  %v83_v34 = vsub.f32 0.0, %v77_v28  ;;  %v205_v24 = vld [vmem:[%s2315_s6 + $0x10] sm:$0xff]  ;;  %v206_v28 = vld [vmem:[%s2315_s6 + $0x18] sm:$0xff]  ;;  %p1833_p1 = scmp.lt.s32.totalorder %s1464_s26, %s1464_s26 }
   0xc   :  { %v90_v32 = vmul.f32 10.0, %v84_v25  ;;  %v85_v35 = vsub.f32 0.0, %v79_v29  ;;  %v1989_v15 = vsub.s32 0, %v1986_v14  ;;  %vm207_vm2 = vcmask 261120   ;;  %s1832_s28 = scalar_lea.vmem %s1464_s26, 32 }
   0xd   :  { %v96_v36 = vsel %vm1963_vm0, %v86_v30, -inf  ;;  %v97_v37 = vsel %vm1963_vm0, %v88_v31, -inf  ;;  %v87_v39 = vmul.f32 10.0, %v81_v33  ;;  %v89_v41 = vmul.f32 10.0, %v83_v34  ;;  %v46_v33 = vld [vmem:[%s2309_s0] sm:$0xff]  ;;  %vm1705_vm4 = vmpackc.low %vm207_vm2, %vm207_vm2 }
   0xe   :  { %v98_v38 = vsel %vm1963_vm0, %v90_v32, -inf  ;;  %v91_v42 = vmul.f32 10.0, %v85_v35  ;;  %vm1855_vm3 = vmmov 0   ;;  %vm551_vm5 = vcmask 195584  }
   0xf   :  { %v99_v40 = vmax.f32 %v96_v36, %v98_v38  ;;  %v101_v43 = vsel %vm1963_vm0, %v87_v39, -inf  ;;  %v102_v45 = vsel %vm1963_vm0, %v89_v41, -inf  ;;  %v50_v36 = vld [vmem:[%s2309_s0 + $0x20] sm:$0xff]  ;;  %v48_v38 = vld [vmem:[%s2309_s0 + $0x10] sm:$0xff]  ;;  %vm937_vm6 = vcmask 7168  }
  0x10   :  { %v103_v46 = vsel %vm1963_vm0, %v91_v42, -inf  ;;  %vm1212_vm7 = vcmask 254976   ;;  %vm1047_vm8 = vcmask 1041409   ;;  %vm1304_vm9 = vcmask 9216  }
  0x11   :  { %v100_v44 = vmax.f32 %v99_v40, %v97_v37  ;;  %v104_v47 = vmax.f32 %v101_v43, %v103_v46  ;;  %v47_v43 = vld [vmem:[%s2309_s0 + $0x8] sm:$0xff]  ;;  %vm1206_vm11 = vcmask 1024  }
  0x13   :  { %v106_v48 = vsub.f32 %v86_v30, %v100_v44  ;;  %v108_v49 = vsub.f32 %v88_v31, %v100_v44  ;;  %v110_v50 = vsub.f32 %v90_v32, %v100_v44  ;;  %v105_v51 = vmax.f32 %v104_v47, %v102_v45  ;;  %v49_v44 = vld [vmem:[%s2309_s0 + $0x18] sm:$0xff] }
  0x14   :  { %v1699_v30 = vpack.c.bf16 %v206_v28, %v205_v24 }
  0x15   :  { %v112_v52 = vmul.f32 1.442695, %v106_v48  ;;  %v116_v53 = vmul.f32 1.442695, %v108_v49  ;;  %v120_v54 = vmul.f32 1.442695, %v110_v50  ;;  %v107_v55 = vsub.f32 %v87_v39, %v105_v51 }
  0x16   :  { %v109_v56 = vsub.f32 %v89_v41, %v105_v51  ;;  %v111_v57 = vsub.f32 %v91_v42, %v105_v51  ;;  %1700 = vmatprep.subr.bf16.mxu0 %v1699_v30  ;;  %v51_v49 = vld [vmem:[%s2309_s0 + $0x28] sm:$0xff]  ;;  %v1853_v51 = vmov 0.0|0.0   ;;  %s1854_s0 = smov 96  }
  0x17   :  { %1770 = vpow2.f32 %v112_v52  ;;  %v114_v58 = vmul.f32 1.442695, %v107_v55  ;;  %1702 = vmatpush3.bf16.msra.mxu0 %v1699_v30  ;;  %1703 = vmatprep.subr.bf16.mxu1 %v1853_v51 }
  0x18   :  { %1772 = vpow2.f32 %v116_v53  ;;  %v118_v59 = vmul.f32 1.442695, %v109_v56  ;;  %v122_v60 = vmul.f32 1.442695, %v111_v57  ;;  %1707 = vmatprep.subr.bf16.mxu0 %v1853_v51  ;;  %v1856_v56 = vmov 0.0  }
  0x19   :  { %1774 = vpow2.f32 %v120_v54  ;;  %1592 = vmatprep.mubr.msk.f32.mxu1 %vm1855_vm3, %v1856_v56 }
  0x1a   :  { %1776 = vpow2.f32 %v114_v58 }
  0x1b   :  { %1778 = vpow2.f32 %v118_v59 }
  0x1c   :  { %1780 = vpow2.f32 %v122_v60 }
  0x21   :  { %v1771_v61 = vpop.eup %1770 }
  0x22   :  { %v1773_v62 = vpop.eup %1772  ;;  %v125_v63 = vsel %vm124_vm1, %v1771_v61, 0.0 }
  0x23   :  { %v1775_v0 = vpop.eup %1774  ;;  %v126_v1 = vsel %vm124_vm1, %v1773_v62, 0.0 }
  0x24   :  { %v1777_v2 = vpop.eup %1776  ;;  %v127_v3 = vadd.f32 %v126_v1, %v125_v63  ;;  %v128_v4 = vsel %vm124_vm1, %v1775_v0, 0.0 }
  0x25   :  { %v1779_v5 = vpop.eup %1778  ;;  %v130_v6 = vsel %vm124_vm1, %v1777_v2, 0.0 }
  0x26   :  { %v1781_v7 = vpop.eup %1780  ;;  %v129_v8 = vadd.f32 %v128_v4, %v127_v3  ;;  %v131_v9 = vsel %vm124_vm1, %v1779_v5, 0.0 }
  0x27   :  { %v132_v10 = vadd.f32 %v131_v9, %v130_v6  ;;  %v133_v11 = vsel %vm124_vm1, %v1781_v7, 0.0 }
  0x28   :  { %1782 = vrcp.f32 %v129_v8 }
  0x29   :  { %v134_v12 = vadd.f32 %v133_v11, %v132_v10  ;;  %v53_v10 = vld [vmem:[%s2313_s4 + $0x1] sm:$0x1] }
  0x2b   :  { %1784 = vrcp.f32 %v134_v12  ;;  %v322_v12 = vsub.f32 1.0, %v53_v10 }
  0x32   :  { %v1783_v16 = vpop.eup %1782 }
  0x33   :  { %v141_v17 = vmul.f32 %v1783_v16, %v1775_v0  ;;  %v137_v18 = vmul.f32 %v1783_v16, %v1771_v61  ;;  %v139_v19 = vmul.f32 %v1783_v16, %v1773_v62 }
  0x35   :  { %v1785_v20 = vpop.eup %1784  ;;  %v168_v21 = vrot.slane %v141_v17, %v1989_v15  ;;  %v152_v22 = vrot.slane %v137_v18, %v1989_v15  ;;  %v160_v25 = vrot.slane %v139_v19, %v1989_v15 }
  0x36   :  { %v138_v23 = vmul.f32 %v1785_v20, %v1777_v2  ;;  %v142_v26 = vmul.f32 %v1785_v20, %v1781_v7  ;;  %v140_v27 = vmul.f32 %v1785_v20, %v1779_v5  ;;  %v52_v7 = vld [vmem:[%s2313_s4] sm:$0x1]  ;;  %v324_v20 = vmul.f32 -1e+09, %v322_v12  ;;  %s1857_s4 = smov 64  }
  0x37   :  { %190 = vperm.xlu1 %1749, %v168_v21   ;;  %174 = vperm.xlu0 %1748, %v152_v22   ;;  %v321_v8 = vsub.f32 1.0, %v52_v7 }
  0x38   :  { %v156_v29 = vrot.slane %v138_v23, %v1989_v15  ;;  %v172_v31 = vrot.slane %v142_v26, %v1989_v15  ;;  %v164_v32 = vrot.slane %v140_v27, %v1989_v15  ;;  %v542_v26 = vrot.slane %v324_v20, %v1989_v15 }
  0x39   :  { %v323_v9 = vmul.f32 -1e+09, %v321_v8 }
  0x3b   :  { %178 = vperm.xlu1 %1749, %v156_v29   ;;  %182 = vperm.xlu0 %1748, %v160_v25   ;;  %v538_v11 = vrot.slane %v323_v9, %v1989_v15 }
  0x3f   :  { %194 = vperm.xlu1 %1749, %v172_v31   ;;  %186 = vperm.xlu0 %1748, %v164_v32  }
  0xb6   :  { %v191_v34 = vpop.permute.xlu1 %190  ;;  %v175_v35 = vpop.permute.xlu0 %174 }
  0xb7   :  { %v2009_v37 = vmul.f32 %v175_v35, %v46_v33  ;;  %v2016_v39 = vmul.f32 %v191_v34, %v50_v36 }
  0xb9   :  { %1577 = vmatprep.mubr.msk.f32.mxu0 %vm207_vm2, %v2009_v37 }
  0xba   :  { %v179_v40 = vpop.permute.xlu1 %178  ;;  %v183_v41 = vpop.permute.xlu0 %182 }
  0xbb   :  { %v2018_v42 = vmul.f32 %v183_v41, %v48_v38  ;;  %v2030_v46 = vmul.f32 %v179_v40, %v47_v43 }
  0xbd   :  { %1578 = vmatmul.mubr.msk.f32.vlgmr.msra.gmra.mrb[0].mxu0 %vm207_vm2, %v2018_v42 }
  0xbe   :  { %v187_v45 = vpop.permute.xlu0 %186  ;;  %1580 = vmatprep.mubr.msk.f32.mxu0 %vm207_vm2, %v2016_v39  ;;  %v195_v48 = vpop.permute.xlu1 %194 }
  0xbf   :  { %v2032_v47 = vmul.f32 %v187_v45, %v49_v44  ;;  %v2041_v50 = vmul.f32 %v195_v48, %v51_v49 }
  0xc1   :  { %1581 = vmatmul.mubr.msk.f32.gmra.mrb[2].mxu0 %vm207_vm2, %v2030_v46 }
  0xc2   :  { %1583 = vmatprep.mubr.msk.f32.mxu0 %vm207_vm2, %v2032_v47 }
  0xc5   :  { %1584 = vmatmul.mubr.msk.f32.gmra.mrb[4].mxu0 %vm207_vm2, %v2041_v50 }
  0xc6   :  { %1607 = vmatprep.mubr.msk.f32.mxu0 %vm1855_vm3, %v1856_v56 }
 0x190   :  { %v1579_v52 = vpop.f32.mrb[0].mxu0 }
 0x191   :  { %v292_v53 = vpop.f32.mrb[1].mxu0 }
 0x192   :  { %v2047_v54 = vpack.i.bf16 %v1579_v52, %v292_v53 }
 0x194   :  { %1751 = vrot.lane.b32.xlu0 %v2047_v54, %s1854_s0  ;;  %v1582_v55 = vpop.f32.mrb[2].mxu0 }
 0x195   :  { %v2052_v57 = vpop.f32.mrb[3].mxu0 }
 0x198   :  { %332 = vrot.lane.b32.xlu0 %v2052_v57, %s1854_s0  ;;  %v2057_v58 = vpop.f32.mrb[4].mxu0 }
 0x199   :  { %v312_v59 = vpop.f32.mrb[5].mxu0 }
 0x19a   :  { %v2059_v60 = vpack.i.bf16 %v312_v59, %v1582_v55 }
 0x19c   :  { %1756 = vrot.lane.b32.xlu1 %v2059_v60, %s1854_s0 }
 0x1a0   :  { %433 = vrot.lane.b32.xlu1 %v2057_v58, %s1854_s0 }
 0x206   :  { %v1752_v61 = vpop.permute.xlu0 %1751 }
 0x207   :  { %v1754_v62 = vunpack.i.h.bf16 %v1752_v61  ;;  %v1753_v63 = vunpack.i.l.bf16 %v1752_v61 }
 0x209   :  { %v1704_v0 = vpack.c.bf16 %v1754_v62, %v1753_v63 }
 0x20a   :  { %v333_v5 = vpop.permute.xlu0 %332 }
 0x20b   :  { %1706 = vmatpush3.bf16.xpose.msk.msra.mxu1 %vm1705_vm4, %v1704_v0 }
 0x20c   :  { %1590 = vmatprep.subr.mxu1 %v1856_v56 }
 0x20e   :  { %v1757_v1 = vpop.permute.xlu1 %1756 }
 0x20f   :  { %v1759_v2 = vunpack.i.h.bf16 %v1757_v1  ;;  %v1758_v3 = vunpack.i.l.bf16 %v1757_v1 }
 0x211   :  { %v1708_v4 = vpack.c.bf16 %v1759_v2, %v1758_v3 }
 0x212   :  { %v434_v6 = vpop.permute.xlu1 %433 }
 0x213   :  { %1591 = vmatpush3.xpose.msk.msra.mxu1 %vm207_vm2, %v333_v5  ;;  %1710 = vmatpush3.bf16.xpose.msk.msra.mxu0 %vm1705_vm4, %v1708_v4 }
 0x214   :  { %1605 = vmatprep.subr.mxu0 %v1856_v56  ;;  %1711 = vmatprep.subr.bf16.mxu1 %v1853_v51 }
 0x216   :  { %1593 = vmatmul.mubr.msk.f32.vlgmr.msra.gmra.mrb[0].mxu1 %vm207_vm2, %v292_v53 }
 0x217   :  { %1595 = vmatprep.mubr.msk.f32.mxu1 %vm1855_vm3, %v1856_v56 }
 0x21a   :  { %1596 = vmatmul.mubr.msk.f32.gmra.mrb[2].mxu1 %vm207_vm2, %v1579_v52 }
 0x21b   :  { %1606 = vmatpush3.xpose.msk.msra.mxu0 %vm207_vm2, %v434_v6  ;;  %1598 = vmatprep.mubr.msk.f32.mxu1 %vm1855_vm3, %v1856_v56 }
 0x21c   :  { %1714 = vmatprep.subr.bf16.mxu0 %v1853_v51 }
 0x21e   :  { %1599 = vmatmul.mubr.msk.f32.gmra.mrb[4].mxu1 %vm207_vm2, %v2052_v57  ;;  %1608 = vmatmul.mubr.msk.f32.vlgmr.msra.gmra.mrb[6].mxu0 %vm207_vm2, %v1582_v55 }
 0x21f   :  { %1610 = vmatprep.mubr.msk.f32.mxu0 %vm1855_vm3, %v1856_v56  ;;  %1622 = vmatprep.mubr.msk.f32.mxu1 %vm1855_vm3, %v1856_v56 }
 0x222   :  { %1611 = vmatmul.mubr.msk.f32.gmra.mrb[8].mxu0 %vm207_vm2, %v312_v59 }
 0x223   :  { %1613 = vmatprep.mubr.msk.f32.mxu0 %vm1855_vm3, %v1856_v56 }
 0x226   :  { %1614 = vmatmul.mubr.msk.f32.gmra.mrb[10].mxu0 %vm207_vm2, %v2057_v58 }
 0x227   :  { %1637 = vmatprep.mubr.msk.f32.mxu0 %vm1855_vm3, %v1856_v56 }
 0x2e9   :  { %v412_v16 = vpop.f32.mrb[0].mxu1 }
 0x2ea   :  { %v527_v17 = vmul.f32 0.17677669, %v412_v16  ;;  %v1594_v18 = vpop.f32.mrb[1].mxu1 }
 0x2ec   :  { %v545_v19 = vadd.f32 %v538_v11, %v527_v17 }
 0x2ed   :  { %v417_v21 = vpop.f32.mrb[2].mxu1 }
 0x2ee   :  { %v528_v22 = vmul.f32 0.17677669, %v417_v21  ;;  %v1597_v23 = vpop.f32.mrb[3].mxu1  ;;  %v552_v24 = vsel %vm551_vm5, %v545_v19, -inf }
 0x2ef   :  { %553 = vmax.xlane.f32.xlu0 %v552_v24 }
 0x2f0   :  { %v546_v25 = vadd.f32 %v538_v11, %v528_v22 }
 0x2f1   :  { %v422_v27 = vpop.f32.mrb[4].mxu1  ;;  %v513_v28 = vpop.f32.mrb[6].mxu0 }
 0x2f2   :  { %v529_v29 = vmul.f32 0.17677669, %v422_v27  ;;  %v530_v30 = vmul.f32 0.17677669, %v513_v28  ;;  %v1600_v31 = vpop.f32.mrb[5].mxu1  ;;  %v1609_v32 = vpop.f32.mrb[7].mxu0 }
 0x2f3   :  { %v555_v33 = vsel %vm551_vm5, %v546_v25, -inf  ;;  %v55_v31 = vld [vmem:[%s2314_s5 + $0x8] sm:$0xff]  ;;  %v58_v32 = vld [vmem:[%s2314_s5 + $0x20] sm:$0xff] }
 0x2f4   :  { %556 = vmax.xlane.f32.xlu1 %v555_v33  ;;  %v548_v34 = vadd.f32 %v542_v26, %v530_v30  ;;  %v547_v41 = vadd.f32 %v538_v11, %v529_v29  ;;  %v54_v33 = vld [vmem:[%s2314_s5] sm:$0xff] }
 0x2f5   :  { %v518_v35 = vpop.f32.mrb[8].mxu0 }
 0x2f6   :  { %v531_v36 = vmul.f32 0.17677669, %v518_v35  ;;  %v1612_v38 = vpop.f32.mrb[9].mxu0  ;;  %v561_v40 = vsel %vm551_vm5, %v548_v34, -inf  ;;  %v558_v48 = vsel %vm551_vm5, %v547_v41, -inf  ;;  %v950_v35 = vsel %vm937_vm6, %v58_v32, 0.0 }
 0x2f7   :  { %562 = vmax.xlane.f32.xlu0 %v561_v40 }
 0x2f8   :  { %v549_v43 = vadd.f32 %v542_v26, %v531_v36  ;;  %v938_v36 = vsel %vm937_vm6, %v54_v33, 0.0 }
 0x2f9   :  { %v523_v44 = vpop.f32.mrb[10].mxu0 }
 0x2fa   :  { %v532_v15 = vmul.f32 0.17677669, %v523_v44  ;;  %v1615_v45 = vpop.f32.mrb[11].mxu0  ;;  %v564_v49 = vsel %vm551_vm5, %v549_v43, -inf }
 0x2fb   :  { %559 = vmax.xlane.f32.xlu0 %v558_v48  ;;  %565 = vmax.xlane.f32.xlu1 %v564_v49 }
 0x2fc   :  { %v550_v52 = vadd.f32 %v542_v26, %v532_v15 }
 0x2fe   :  { %v567_v53 = vsel %vm551_vm5, %v550_v52, -inf }
 0x2ff   :  { %568 = vmax.xlane.f32.xlu0 %v567_v53 }
 0x30c   :  { %1761 = vrot.lane.b32.xlu1 %v2047_v54, %s1857_s4 }
 0x37c   :  { %v554_v55 = vpop.xlane.xlu0 %553 }
 0x37d   :  { %v570_v59 = vsub.f32 %v545_v19, %v554_v55 }
 0x37f   :  { %v576_v61 = vmul.f32 1.442695, %v570_v59 }
 0x381   :  { %1786 = vpow2.f32 %v576_v61  ;;  %v557_v62 = vpop.xlane.xlu1 %556 }
 0x382   :  { %v571_v63 = vsub.f32 %v546_v25, %v557_v62  ;;  %v2173_v62 = vld [vmem:[%s2310_s1] sm:$0x3] }
 0x384   :  { %v578_v0 = vmul.f32 1.442695, %v571_v63  ;;  %v563_v1 = vpop.xlane.xlu0 %562 }
 0x385   :  { %v573_v2 = vsub.f32 %v548_v34, %v563_v1  ;;  %v939_v34 = vsel %vm937_vm6, %v55_v31, 0.0 }
 0x386   :  { %1788 = vpow2.f32 %v578_v0  ;;  %v940_v40 = vadd.f32 %v939_v34, %v938_v36 }
 0x387   :  { %v582_v3 = vmul.f32 1.442695, %v573_v2  ;;  %v1211_v2 = vmul.f32 %v2173_v62, %v2173_v62 }
 0x388   :  { %v560_v4 = vpop.xlane.xlu0 %559  ;;  %v566_v5 = vpop.xlane.xlu1 %565 }
 0x389   :  { %1790 = vpow2.f32 %v582_v3  ;;  %v572_v6 = vsub.f32 %v547_v41, %v560_v4  ;;  %v574_v7 = vsub.f32 %v549_v43, %v566_v5  ;;  %v2159_v43 = vld [vmem:[%s2310_s1 + $0x2] sm:$0x3]  ;;  %v1213_v5 = vsel %vm1212_vm7, %v1211_v2, 0.0 }
 0x38a   :  { %v1219_v45 = vmul.f32 %v2159_v43, %v2159_v43 }
 0x38b   :  { %v2107_v8 = vpop.eup %1786  ;;  %v580_v9 = vmul.f32 1.442695, %v572_v6  ;;  %v584_v54 = vmul.f32 1.442695, %v574_v7 }
 0x38c   :  { %v1762_v10 = vpop.permute.xlu1 %1761  ;;  %v569_v11 = vpop.xlane.xlu0 %568  ;;  %v588_v12 = vsel %vm551_vm5, %v2107_v8, 0.0  ;;  %v1220_v53 = vsel %vm1212_vm7, %v1219_v45, 0.0  ;;  %v816_v45 = vld [vmem:[%s2316_s7 + $0x10] sm:$0xff] }
 0x38d   :  { %1792 = vpow2.f32 %v580_v9  ;;  %v1764_v16 = vunpack.i.h.bf16 %v1762_v10  ;;  %v1763_v17 = vunpack.i.l.bf16 %v1762_v10  ;;  %v575_v18 = vsub.f32 %v550_v52, %v569_v11  ;;  %589 = vadd.xlane.f32.xlu1 %v588_v12  ;;  %v2166_v52 = vld [vmem:[%s2310_s1 + $0x4] sm:$0x3] }
 0x38e   :  { %1794 = vpow2.f32 %v584_v54  ;;  %v1340_v55 = vmul.f32 %v2166_v52, %v2166_v52 }
 0x38f   :  { %v1712_v19 = vpack.c.bf16 %v1764_v16, %v1763_v17  ;;  %v586_v20 = vmul.f32 1.442695, %v575_v18 }
 0x390   :  { %v2111_v21 = vpop.eup %1788  ;;  %v1341_v63 = vsel %vm1212_vm7, %v1340_v55, 0.0 }
 0x391   :  { %1796 = vpow2.f32 %v586_v20  ;;  %1713 = vmatpush3.bf16.msra.mxu1 %v1712_v19  ;;  %v591_v22 = vsel %vm551_vm5, %v2111_v21, 0.0 }
 0x392   :  { %592 = vadd.xlane.f32.xlu0 %v591_v22  ;;  %1620 = vmatprep.subr.mxu1 %v1856_v56  ;;  %v814_v22 = vld [vmem:[%s2316_s7] sm:$0xff] }
 0x393   :  { %v2116_v23 = vpop.eup %1790 }
 0x394   :  { %v597_v24 = vsel %vm551_vm5, %v2116_v23, 0.0 }
 0x395   :  { %598 = vadd.xlane.f32.xlu1 %v597_v24  ;;  %v815_v24 = vld [vmem:[%s2316_s7 + $0x8] sm:$0xff] }
 0x397   :  { %v2120_v25 = vpop.eup %1792 }
 0x398   :  { %v2122_v26 = vpop.eup %1794  ;;  %v594_v27 = vsel %vm551_vm5, %v2120_v25, 0.0 }
 0x399   :  { %v600_v28 = vsel %vm551_vm5, %v2122_v26, 0.0  ;;  %595 = vadd.xlane.f32.xlu0 %v594_v27 }
 0x39a   :  { %601 = vadd.xlane.f32.xlu1 %v600_v28 }
 0x39b   :  { %v2128_v29 = vpop.eup %1796 }
 0x39c   :  { %v603_v30 = vsel %vm551_vm5, %v2128_v29, 0.0 }
 0x39d   :  { %604 = vadd.xlane.f32.xlu0 %v603_v30  ;;  %v1717_v30 = vpack.c.bf16 %v815_v24, %v814_v22 }
 0x3ab   :  { %622 = vrot.lane.b32.xlu1 %v2052_v57, %s1857_s4  ;;  %v56_v57 = vld [vmem:[%s2314_s5 + $0x10] sm:$0xff] }
 0x3ac   :  { %v941_v44 = vsel %vm937_vm6, %v56_v57, 0.0 }
 0x3ad   :  { %v942_v48 = vadd.f32 %v941_v44, %v940_v40 }
 0x3af   :  { %720 = vrot.lane.b32.xlu1 %v2057_v58, %s1857_s4  ;;  %v57_v58 = vld [vmem:[%s2314_s5 + $0x18] sm:$0xff]  ;;  %v943_v59 = vrot.slane %v942_v48, 4 }
 0x3b0   :  { %v949_v38 = vsel %vm937_vm6, %v57_v58, 0.0 }
 0x3b1   :  { %v951_v41 = vadd.f32 %v950_v35, %v949_v38  ;;  %v944_v0 = vadd.f32 %v943_v59, %v942_v48 }
 0x3b3   :  { %969 = vperm.xlu1 %1749, %v55_v31   ;;  %1766 = vrot.lane.b32.xlu0 %v2059_v60, %s1857_s4  ;;  %v59_v60 = vld [vmem:[%s2314_s5 + $0x28] sm:$0xff]  ;;  %v945_v3 = vrot.slane %v944_v0, 2  ;;  %s1828_s4 = scalar_lea.vmem %s1464_s26, 16 }
 0x3b4   :  { %v952_v15 = vsel %vm937_vm6, %v59_v60, 0.0  ;;  %p1829_p0 = scmp.ne.s32.totalorder %s1464_s26, %s1828_s4  ;;  %p1834_p2 = scmp.lt.s32.totalorder %s1832_s28, %s1828_s4 }
 0x3b5   :  { %v953_v49 = vadd.f32 %v952_v15, %v951_v41  ;;  %v946_v7 = vadd.f32 %v945_v3, %v944_v0 }
 0x3b6   :  { %p1835_p3 = por %p1834_p2, %p1833_p1 }
 0x3b7   :  { %984 = vperm.xlu1 %1749, %v58_v32   ;;  %964 = vperm.xlu0 %1748, %v54_v33   ;;  %v954_v61 = vrot.slane %v953_v49, 4  ;;  %v947_v54 = vrot.slane %v946_v7, 1 }
 0x3b8   :  { %p1836_p4 = pnand %p1835_p3, %p1829_p0 }
 0x3b9   :  { %v955_v1 = vadd.f32 %v954_v61, %v953_v49  ;;  %v948_v11 = vadd.f32 %v947_v54, %v946_v7  ;;  %v1037_v54 = vld [vmem:[%s2317_s8 + $0x18] sm:$0xff] }
 0x3bb   :  { %974 = vperm.xlu1 %1749, %v56_v57   ;;  %979 = vperm.xlu0 %1748, %v57_v58   ;;  %v956_v4 = vrot.slane %v955_v1, 2  ;;  %v960_v16 = vadd.f32 1e-06, %v948_v11  ;;  %v1122_v11 = vld [vmem:[%s2319_s10] sm:$0xff] }
 0x3bd   :  { %v957_v6 = vadd.f32 %v956_v4, %v955_v1 }
 0x3bf   :  { %989 = vperm.xlu1 %1749, %v59_v60   ;;  %v958_v9 = vrot.slane %v957_v6, 1 }
 0x3c1   :  { %v959_v10 = vadd.f32 %v958_v9, %v957_v6  ;;  %v1035_v6 = vld [vmem:[%s2317_s8 + $0x8] sm:$0xff]  ;;  %v1036_v9 = vld [vmem:[%s2317_s8 + $0x10] sm:$0xff] }
 0x3c3   :  { %v961_v12 = vadd.f32 1e-06, %v959_v10  ;;  %v1729_v10 = vpack.c.bf16 %v1037_v54, %v1036_v9 }
 0x3da   :  { %1221 = vadd.xlane.f32.xlu0 %v1220_v53 }
 0x3de   :  { %1342 = vadd.xlane.f32.xlu0 %v1341_v63 }
 0x3e3   :  { %1214 = vadd.xlane.f32.xlu1 %v1213_v5  ;;  %v1034_v5 = vld [vmem:[%s2317_s8] sm:$0xff] }
 0x3e4   :  { %v1726_v7 = vpack.c.bf16 %v1035_v6, %v1034_v5 }
 0x3f4   :  { %1027 = vperm.xlu1 %1749, %v961_v12   ;;  %1022 = vperm.xlu0 %1748, %v960_v16   ;;  %v1123_v12 = vld [vmem:[%s2319_s10 + $0x8] sm:$0xff] }
 0x3f5   :  { %v1732_v16 = vpack.c.bf16 %v1123_v12, %v1122_v11 }
 0x41a   :  { %v590_v17 = vpop.xlane.xlu1 %589 }
 0x41b   :  { %1798 = vrcp.f32 %v590_v17 }
 0x41f   :  { %v593_v18 = vpop.xlane.xlu0 %592 }
 0x420   :  { %1800 = vrcp.f32 %v593_v18 }
 0x422   :  { %v599_v19 = vpop.xlane.xlu1 %598 }
 0x425   :  { %v1799_v28 = vpop.eup %1798 }
 0x426   :  { %v596_v20 = vpop.xlane.xlu0 %595  ;;  %v612_v32 = vmul.f32 %v1799_v28, %v2107_v8 }
 0x427   :  { %v602_v27 = vpop.xlane.xlu1 %601  ;;  %1802 = vrcp.f32 %v596_v20 }
 0x428   :  { %1804 = vrcp.f32 %v599_v19 }
 0x429   :  { %1806 = vrcp.f32 %v602_v27 }
 0x42a   :  { %v605_v31 = vpop.xlane.xlu0 %604  ;;  %v1801_v57 = vpop.eup %1800 }
 0x42b   :  { %v623_v33 = vpop.permute.xlu1 %622  ;;  %v613_v35 = vmul.f32 %v1801_v57, %v2111_v21  ;;  %1808 = vrcp.f32 %v605_v31 }
 0x42c   :  { %1621 = vmatpush3.msra.mxu1 %v623_v33 }
 0x42d   :  { %1623 = vmatmul.mubr.msk.f32.vlgmr.msra.gmra.mrb[6].mxu1 %vm551_vm5, %v612_v32  ;;  %1718 = vmatprep.subr.bf16.mxu1 %v1717_v30 }
 0x42e   :  { %v1767_v58 = vpop.permute.xlu0 %1766  ;;  %1625 = vmatprep.mubr.msk.f32.mxu1 %vm1855_vm3, %v1856_v56  ;;  %1720 = vmatpush3.bf16.msra.mxu1 %v1717_v30 }
 0x42f   :  { %v1769_v60 = vunpack.i.h.bf16 %v1767_v58  ;;  %v1768_v34 = vunpack.i.l.bf16 %v1767_v58  ;;  %v721_v44 = vpop.permute.xlu1 %720 }
 0x431   :  { %v1803_v36 = vpop.eup %1802  ;;  %v1715_v38 = vpack.c.bf16 %v1769_v60, %v1768_v34  ;;  %1626 = vmatmul.mubr.msk.f32.gmra.mrb[8].mxu1 %vm551_vm5, %v613_v35 }
 0x432   :  { %1628 = vmatprep.mubr.msk.f32.mxu1 %vm1855_vm3, %v1856_v56  ;;  %v614_v8 = vmul.f32 %v1803_v36, %v2120_v25  ;;  %v1805_v40 = vpop.eup %1804 }
 0x433   :  { %1716 = vmatpush3.bf16.msra.mxu0 %v1715_v38  ;;  %v615_v41 = vmul.f32 %v1805_v40, %v2116_v23  ;;  %v1807_v21 = vpop.eup %1806  ;;  %v970_v17 = vpop.permute.xlu1 %969 }
 0x434   :  { %1635 = vmatprep.subr.mxu0 %v1856_v56  ;;  %v616_v25 = vmul.f32 %v1807_v21, %v2122_v26  ;;  %v817_v26 = vld [vmem:[%s2316_s7 + $0x18] sm:$0xff] }
 0x435   :  { %1629 = vmatmul.mubr.msk.f32.gmra.mrb[10].mxu1 %vm551_vm5, %v614_v8  ;;  %v1809_v15 = vpop.eup %1808  ;;  %v1721_v48 = vpack.c.bf16 %v817_v26, %v816_v45 }
 0x436   :  { %v617_v23 = vmul.f32 %v1809_v15, %v2128_v29  ;;  %v965_v19 = vpop.permute.xlu0 %964 }
 0x437   :  { %1636 = vmatpush3.msra.mxu0 %v721_v44  ;;  %1722 = vmatprep.subr.bf16.mxu1 %v1721_v48  ;;  %v985_v24 = vpop.permute.xlu1 %984 }
 0x438   :  { %1638 = vmatmul.mubr.msk.f32.vlgmr.msra.gmra.mrb[12].mxu0 %vm551_vm5, %v615_v41  ;;  %1725 = vmatprep.subr.bf16.mxu0 %v1853_v51 }
 0x439   :  { %1640 = vmatprep.mubr.msk.f32.mxu0 %vm1855_vm3, %v1856_v56  ;;  %1724 = vmatpush3.bf16.msra.mxu1 %v1721_v48 }
 0x43a   :  { %1731 = vmatprep.subr.bf16.mxu1 %v1853_v51  ;;  %1727 = vmatpush3.bf16.msra.mxu0 %v1726_v7  ;;  %v980_v33 = vpop.permute.xlu0 %979 }
 0x43b   :  { %1728 = vmatprep.subr.bf16.mxu0 %v1853_v51  ;;  %v975_v60 = vpop.permute.xlu1 %974 }
 0x43c   :  { %1641 = vmatmul.mubr.msk.f32.gmra.mrb[14].mxu0 %vm551_vm5, %v616_v25 }
 0x43d   :  { %1643 = vmatprep.mubr.msk.f32.mxu0 %vm1855_vm3, %v1856_v56 }
 0x43e   :  { %1730 = vmatpush3.bf16.msra.mxu0 %v1729_v10 }
 0x43f   :  { %1685 = vmatprep.subr.mxu0 %v1856_v56 }
 0x440   :  { %1644 = vmatmul.mubr.msk.f32.gmra.mrb[16].mxu0 %vm551_vm5, %v617_v23 }
 0x441   :  { %1671 = vmatprep.mubr.msk.f32.mxu0 %vm1855_vm3, %v1856_v56 }
 0x467   :  { %v1222_v35 = vpop.xlane.xlu0 %1221 }
 0x46b   :  { %v1343_v25 = vpop.xlane.xlu0 %1342 }
 0x500   :  { %v702_v49 = vpop.f32.mrb[6].mxu1 }
 0x501   :  { %v1624_v29 = vpop.f32.mrb[7].mxu1  ;;  %1654 = vmatprep.mubr.msk.f32.mxu1 %vm207_vm2, %v702_v49  ;;  %v1223_v49 = vadd.f32 1e-08, %v1222_v35 }
 0x503   :  { %1810 = vrsqrt.f32 %v1223_v49 }
 0x504   :  { %v707_v53 = vpop.f32.mrb[8].mxu1 }
 0x505   :  { %v1627_v55 = vpop.f32.mrb[9].mxu1  ;;  %1655 = vmatmul.mubr.msk.f32.vlgmr.msra.gmra.mrb[12].mxu1 %vm207_vm2, %v707_v53 }
 0x506   :  { %1733 = vmatpush3.bf16.msra.mxu1 %v1732_v16 }
 0x507   :  { %1734 = vmatprep.subr.bf16.mxu1 %v1853_v51 }
 0x508   :  { %v712_v59 = vpop.f32.mrb[10].mxu1 }
 0x509   :  { %v1630_v61 = vpop.f32.mrb[11].mxu1  ;;  %1657 = vmatprep.mubr.msk.f32.mxu1 %vm207_vm2, %v712_v59  ;;  %v1023_v59 = vpop.permute.xlu0 %1022 }
 0x50a   :  { %1812 = vrcp.f32 %v1023_v59 }
 0x50b   :  { %v800_v63 = vpop.f32.mrb[12].mxu0 }
 0x50c   :  { %v1639_v0 = vpop.f32.mrb[13].mxu0  ;;  %1658 = vmatmul.mubr.msk.f32.gmra.mrb[14].mxu1 %vm207_vm2, %v800_v63 }
 0x50d   :  { %v1811_v54 = vpop.eup %1810 }
 0x50f   :  { %v805_v1 = vpop.f32.mrb[14].mxu0 }
 0x510   :  { %v1642_v2 = vpop.f32.mrb[15].mxu0  ;;  %1660 = vmatprep.mubr.msk.f32.mxu1 %vm207_vm2, %v805_v1 }
 0x511   :  { %v1344_v2 = vadd.f32 1e-08, %v1343_v25 }
 0x513   :  { %v810_v3 = vpop.f32.mrb[16].mxu0 }
 0x514   :  { %v1645_v4 = vpop.f32.mrb[17].mxu0  ;;  %1661 = vmatmul.mubr.msk.f32.gmra.mrb[16].mxu1 %vm207_vm2, %v810_v3  ;;  %v1813_v10 = vpop.eup %1812 }
 0x515   :  { %1682 = vmatprep.mubr.msk.f32.mxu1 %vm1855_vm3, %v1856_v56 }
 0x5d8   :  { %v1656_v18 = vpop.f32.mrb[12].mxu1 }
 0x5d9   :  { %v932_v20 = vadd.f32 %v1656_v18, %v2018_v42  ;;  %v902_v22 = vpop.f32.mrb[13].mxu1 }
 0x5da   :  { %v931_v27 = vadd.f32 %v902_v22, %v2009_v37  ;;  %v990_v37 = vpop.permute.xlu1 %989 }
 0x5db   :  { %v993_v28 = vmul.f32 %v970_v17, %v932_v20  ;;  %v1225_v20 = vmul.f32 %v1811_v54, %v2159_v43  ;;  %v1124_v43 = vld [vmem:[%s2319_s10 + $0x10] sm:$0xff] }
 0x5dc   :  { %v992_v30 = vmul.f32 %v965_v19, %v931_v27 }
 0x5dd   :  { %v999_v31 = vsel %vm207_vm2, %v993_v28, 0.0  ;;  %v1125_v28 = vld [vmem:[%s2319_s10 + $0x18] sm:$0xff] }
 0x5de   :  { %v998_v32 = vsel %vm207_vm2, %v992_v30, 0.0  ;;  %v1215_v45 = vpop.xlane.xlu1 %1214 }
 0x5df   :  { %v1000_v57 = vadd.f32 %v999_v31, %v998_v32  ;;  %v1659_v58 = vpop.f32.mrb[14].mxu1  ;;  %v1216_v0 = vadd.f32 1e-08, %v1215_v45 }
 0x5e0   :  { %v912_v51 = vpop.f32.mrb[15].mxu1  ;;  %v934_v42 = vadd.f32 %v1659_v58, %v2030_v46 }
 0x5e1   :  { %v933_v34 = vadd.f32 %v912_v51, %v2016_v39  ;;  %v1320_v51 = vand.u32 127, %v92_v13 }
 0x5e2   :  { %v995_v15 = vmul.f32 %v980_v33, %v934_v42 }
 0x5e3   :  { %v994_v36 = vmul.f32 %v975_v60, %v933_v34  ;;  %vm1321_vm10 = vcmp.eq.s32.totalorder %v1986_v14, %v1320_v51 }
 0x5e4   :  { %v1009_v46 = vsel %vm207_vm2, %v995_v15, 0.0 }
 0x5e5   :  { %v1001_v38 = vsel %vm207_vm2, %v994_v36, 0.0 }
 0x5e6   :  { %v1002_v8 = vadd.f32 %v1001_v38, %v1000_v57 }
 0x5e7   :  { %v1662_v40 = vpop.f32.mrb[16].mxu1 }
 0x5e8   :  { %v1003_v41 = vrot.slane %v1002_v8, 4  ;;  %v936_v44 = vadd.f32 %v1662_v40, %v2041_v50  ;;  %v922_v21 = vpop.f32.mrb[17].mxu1  ;;  %v1028_v50 = vpop.permute.xlu1 %1027 }
 0x5e9   :  { %v935_v23 = vadd.f32 %v922_v21, %v2032_v47  ;;  %1814 = vrcp.f32 %v1028_v50 }
 0x5ea   :  { %v1004_v26 = vadd.f32 %v1003_v41, %v1002_v8  ;;  %v997_v39 = vmul.f32 %v990_v37, %v936_v44  ;;  %1816 = vrsqrt.f32 %v1216_v0 }
 0x5eb   :  { %v996_v48 = vmul.f32 %v985_v24, %v935_v23  ;;  %1818 = vrsqrt.f32 %v1344_v2 }
 0x5ec   :  { %v1005_v53 = vrot.slane %v1004_v26, 2  ;;  %v1012_v61 = vsel %vm207_vm2, %v997_v39, 0.0 }
 0x5ed   :  { %v1010_v29 = vsel %vm207_vm2, %v996_v48, 0.0  ;;  %v1505_v48 = vld [vmem:[#allocation2] ss:$0 sm:$0xff] }
 0x5ee   :  { %v1011_v55 = vadd.f32 %v1010_v29, %v1009_v46  ;;  %v1006_v47 = vadd.f32 %v1005_v53, %v1004_v26 }
 0x5f0   :  { %v1013_v63 = vadd.f32 %v1012_v61, %v1011_v55  ;;  %v1007_v4 = vrot.slane %v1006_v47, 1 }
 0x5f2   :  { %v1014_v1 = vrot.slane %v1013_v63, 4  ;;  %v1008_v7 = vadd.f32 %v1007_v4, %v1006_v47 }
 0x5f3   :  { %v1815_v12 = vpop.eup %1814 }
 0x5f4   :  { %v1015_v3 = vadd.f32 %v1014_v1, %v1013_v63  ;;  %v1031_v16 = vmul.f32 %v1813_v10, %v1008_v7  ;;  %v1817_v18 = vpop.eup %1816 }
 0x5f5   :  { %v1819_v22 = vpop.eup %1818  ;;  %v1218_v24 = vmul.f32 %v1817_v18, %v2173_v62  ;;  %v1735_v62 = vpack.c.bf16 %v1125_v28, %v1124_v43 }
 0x5f6   :  { %v1016_v5 = vrot.slane %v1015_v3, 2  ;;  %v1346_v27 = vmul.f32 %v1819_v22, %v2166_v52  ;;  %v1503_v52 = vld [vmem:[%s2318_s9] ss:$0 sm:$0xff] }
 0x5f7   :  { %1736 = vmatpush3.bf16.msra.mxu1 %v1735_v62 }
 0x5f8   :  { %v1017_v6 = vadd.f32 %v1016_v5, %v1015_v3 }
 0x5fa   :  { %v1018_v9 = vrot.slane %v1017_v6, 1 }
 0x5fc   :  { %v1019_v11 = vadd.f32 %v1018_v9, %v1017_v6 }
 0x5fe   :  { %v1033_v17 = vmul.f32 %v1815_v12, %v1019_v11 }
 0x600   :  { %v1048_v19 = vsel %vm1047_vm8, %v1033_v17, %v1031_v16 }
 0x601   :  { %1672 = vmatmul.mubr.msk.f32.vlgmr.msra.gmra.mrb[18].mxu0 %vm207_vm2, %v1048_v19 }
 0x602   :  { %1686 = vmatpush3.xpose.msk.msra.mxu0 %vm207_vm2, %v1225_v20  ;;  %1687 = vmatprep.mubr.msk.f32.mxu0 %vm1855_vm3, %v1856_v56 }
 0x603   :  { %1690 = vmatprep.subr.mxu0 %v1856_v56 }
 0x605   :  { %1688 = vmatmul.mubr.msk.f32.vlgmr.msra.gmra.mrb[20].mxu0 %vm207_vm2, %v1218_v24 }
 0x606   :  { %1691 = vmatpush3.xpose.msk.msra.mxu0 %vm207_vm2, %v1346_v27  ;;  %1692 = vmatprep.mubr.msk.f32.mxu0 %vm1855_vm3, %v1856_v56 }
 0x609   :  { %1693 = vmatmul.mubr.msk.f32.vlgmr.msra.gmra.mrb[22].mxu0 %vm207_vm2, %v1218_v24 }
 0x6d4   :  { %v1117_v30 = vpop.f32.mrb[18].mxu0 }
 0x6d5   :  { %v1118_v31 = vadd.f32 %v1503_v52, %v1117_v30  ;;  %v1673_v32 = vpop.f32.mrb[19].mxu0 }
 0x6d7   :  { %v1121_v56 = vmax.f32 %v1118_v31, 0.0 }
 0x6d8   :  { %v1298_v33 = vpop.f32.mrb[20].mxu0 }
 0x6d9   :  { %v1303_v57 = vmul.f32 14.285714, %v1298_v33  ;;  %1683 = vmatmul.mubr.msk.f32.vlgmr.msra.gmra.mrb[18].mxu1 %vm207_vm2, %v1121_v56  ;;  %v1689_v58 = vpop.f32.mrb[21].mxu0 }
 0x6db   :  { %v1305_v60 = vsel %vm1304_vm9, %v1303_v57, -inf  ;;  %v1322_v26 = vsel %vm1321_vm10, %v1303_v57, 0.0 }
 0x6dc   :  { %1306 = vmax.xlane.f32.xlu0 %v1305_v60  ;;  %v1416_v34 = vpop.f32.mrb[22].mxu0  ;;  %v1323_v39 = vsel %vm1304_vm9, %v1322_v26, 0.0 }
 0x6dd   :  { %v1420_v35 = vmul.f32 14.285714, %v1416_v34  ;;  %v1694_v36 = vpop.f32.mrb[23].mxu0 }
 0x6df   :  { %v1421_v42 = vsel %vm1304_vm9, %v1420_v35, -inf  ;;  %v1433_v38 = vsel %vm1321_vm10, %v1420_v35, 0.0 }
 0x6e0   :  { %1422 = vmax.xlane.f32.xlu1 %v1421_v42  ;;  %v1434_v37 = vsel %vm1304_vm9, %v1433_v38, 0.0 }
 0x6e4   :  { %1435 = vadd.xlane.f32.xlu1 %v1434_v37 }
 0x769   :  { %v1307_v8 = vpop.xlane.xlu0 %1306 }
 0x76a   :  { %v1308_v40 = vsub.f32 %v1303_v57, %v1307_v8 }
 0x76c   :  { %v1309_v41 = vmul.f32 1.442695, %v1308_v40 }
 0x76d   :  { %v1423_v44 = vpop.xlane.xlu1 %1422 }
 0x76e   :  { %1820 = vpow2.f32 %v1309_v41  ;;  %v1424_v13 = vsub.f32 %v1420_v35, %v1423_v44 }
 0x770   :  { %v1425_v21 = vmul.f32 1.442695, %v1424_v13 }
 0x771   :  { %v1436_v3 = vpop.xlane.xlu1 %1435 }
 0x772   :  { %1822 = vpow2.f32 %v1425_v21 }
 0x778   :  { %v1821_v25 = vpop.eup %1820 }
 0x779   :  { %v1311_v15 = vsel %vm1304_vm9, %v1821_v25, 0.0 }
 0x77a   :  { %1312 = vadd.xlane.f32.xlu0 %v1311_v15 }
 0x77c   :  { %v1823_v23 = vpop.eup %1822 }
 0x77d   :  { %v1427_v45 = vsel %vm1304_vm9, %v1823_v23, 0.0 }
 0x77e   :  { %1428 = vadd.xlane.f32.xlu0 %v1427_v45 }
 0x782   :  { %1324 = vadd.xlane.f32.xlu0 %v1323_v39 }
 0x7ac   :  { %v1202_v49 = vpop.f32.mrb[18].mxu1 }
 0x7ad   :  { %v1203_v46 = vadd.f32 %v1505_v48, %v1202_v49  ;;  %v1684_v29 = vpop.f32.mrb[19].mxu1 }
 0x7af   :  { %1207 = vst.msk [vmem:[%s2321_s12] sm:$0x3] %vm1206_vm11, %v1203_v46 }
 0x807   :  { %v1313_v53 = vpop.xlane.xlu0 %1312 }
 0x808   :  { %1824 = vlog2.f32 %v1313_v53 }
 0x80b   :  { %v1429_v55 = vpop.xlane.xlu0 %1428 }
 0x80c   :  { %1826 = vlog2.f32 %v1429_v55 }
 0x80f   :  { %v1325_v63 = vpop.xlane.xlu0 %1324 }
 0x812   :  { %v1825_v59 = vpop.eup %1824 }
 0x813   :  { %v1315_v14 = vmul.f32 0.6931472, %v1825_v59 }
 0x815   :  { %v1316_v61 = vadd.f32 %v1315_v14, %v1307_v8 }
 0x816   :  { %v1827_v50 = vpop.eup %1826 }
 0x817   :  { %v1431_v0 = vmul.f32 0.6931472, %v1827_v50  ;;  %v1326_v47 = vsub.f32 %v1316_v61, %v1325_v63 }
 0x819   :  { %v1327_v1 = vsel %vm1206_vm11, %v1326_v47, 0.0  ;;  %v1432_v2 = vadd.f32 %v1431_v0, %v1423_v44 }
 0x81a   :  { %1328 = vadd.xlane.f32.xlu0 %v1327_v1 }
 0x81b   :  { %v1437_v4 = vsub.f32 %v1432_v2, %v1436_v3 }
 0x81d   :  { %v1438_v5 = vsel %vm1206_vm11, %v1437_v4, 0.0 }
 0x81e   :  { %1439 = vadd.xlane.f32.xlu1 %v1438_v5 }
 0x8a7   :  { %v1329_v6 = vpop.xlane.xlu0 %1328 }
 0x8a8   :  { %v1330_v7 = vrot.slane %v1329_v6, 4 }
 0x8aa   :  { %v1331_v9 = vadd.f32 %v1330_v7, %v1329_v6 }
 0x8ab   :  { %v1440_v54 = vpop.xlane.xlu1 %1439 }
 0x8ac   :  { %v1332_v10 = vrot.slane %v1331_v9, 2  ;;  %v1441_v11 = vrot.slane %v1440_v54, 4 }
 0x8ae   :  { %v1442_v12 = vadd.f32 %v1441_v11, %v1440_v54  ;;  %v1333_v16 = vadd.f32 %v1332_v10, %v1331_v9 }
 0x8b0   :  { %v1443_v17 = vrot.slane %v1442_v12, 2  ;;  %v1334_v18 = vrot.slane %v1333_v16, 1 }
 0x8b2   :  { %v1444_v19 = vadd.f32 %v1443_v17, %v1442_v12  ;;  %v1335_v20 = vadd.f32 %v1334_v18, %v1333_v16 }
 0x8b4   :  { %1737 = vpush %v1335_v20  ;;  %v1445_v22 = vrot.slane %v1444_v19, 1 }
 0x8b6   :  { %v1446_v24 = vadd.f32 %v1445_v22, %v1444_v19 }
 0x8b8   :  { %1739 = vpush %v1446_v24 }
 0x8e5   :  { %s1738_s12 = spop %1737 }
 0x8e6   :  { %s1339_s23 = smul.f32 0.5, %s1738_s12 }
 0x8e9   :  { %s1740_s1 = spop %1739 }
 0x8ea   :  { %s1450_s0 = smul.f32 0.5, %s1740_s1 }
 0x8ec   :  { %s1451_s24 = sadd.f32 %s1450_s0, %s1339_s23 }
 0x8ee   :  { %s1452_s27 = smul.f32 0.5, %s1451_s24 }
 0x8f0   :  { %v1453_v27 = vstv %s1452_s27 }
 0x8f1   :  { %1454 = vst.msk [vmem:[#allocation3] sm:$0x1] %vm124_vm1, %v1453_v27 }
 0x8f2   :  { %1839 = shalt.err (!%p1836_p4)
}
 0x8f3   :  { %s1840_s3 = scalar_lea.hbm %s2322_s13, 16 }
 0x8f4   :  { %p1841_p5 = scmp.ne.s32.totalorder %s2322_s13, %s1840_s3  ;;  %p1844_p6 = scmp.lt.u32.totalorder %s1840_s3, %s2322_s13 }
 0x8f6   :  { %p1846_p7 = pnand %p1844_p6, %p1841_p5 }
 0x8f8   :  { %1849 = shalt.err (!%p1846_p7)
}
 0x8f9   :  { %1466 = dma.vmem_to_hbm [thread:$0]  %s1464_s26, 16, %s2322_s13, [#allocation4]  }
 0x8fa   :  { %1850 = dma.done.wait [#allocation4], 16  }
 0x8fb   :  { %1851 = vsyncadd [#allocation4], 4294967280 }
 0x8fc   :  { %1472 = vsyncpa [#allocation4], 1 }

</bundles_post_ra>
